<compile_context>
chip_gen: v7x
topology: tpu7x:2x2x1
jax: 0.10.0
libtpu: 0.0.40
codegen_flags: <defaults>
</compile_context>

<pallas_src>
import math

import jax
import jax.numpy as jnp
from jax.experimental import pallas as pl
from jax.experimental.pallas import tpu as pltpu

N_LAYERS = 4
EPS = 1e-6


def _magformer_kernel(x_ref, pos_ref, mask_ref,
                      wqkv_ref, wo_ref,
                      w13_ref, w2_ref,
                      wfc_ref, bfc_ref,
                      o_ref):
    BS, D = x_ref.shape
    inv_sqrt_d = 1.0 / math.sqrt(D)

    # Positional encoding (pre-tiled to (BS, D)); residual stream flat, f32.
    h = x_ref[...] + pos_ref[...]                                    # (BS, D) f32
    mask = mask_ref[...]                                             # (BS, BS) f32

    def rmsnorm(v):                                                  # gamma folded into weights
        ms = jnp.mean(v * v, axis=-1, keepdims=True)
        return v * jax.lax.rsqrt(ms + EPS)

    for l in range(N_LAYERS):
        # ---- pre-norm + single-head self-attention + residual ----
        y = rmsnorm(h).astype(jnp.bfloat16)                          # (BS, D)
        q = jnp.dot(y, wqkv_ref[l, 0], preferred_element_type=jnp.float32)
        k = jnp.dot(y, wqkv_ref[l, 1], preferred_element_type=jnp.float32)
        v = jnp.dot(y, wqkv_ref[l, 2], preferred_element_type=jnp.float32)

        # block-diagonal (BS, BS) attention; cross-batch entries masked to -1e30
        s = jax.lax.dot_general(
            q.astype(jnp.bfloat16), k.astype(jnp.bfloat16),
            dimension_numbers=(((1,), (1,)), ((), ())),              # q @ k.T
            preferred_element_type=jnp.float32) * inv_sqrt_d + mask
        s = s - jnp.max(s, axis=-1, keepdims=True)
        p = jnp.exp(s)
        p = p * pl.reciprocal(jnp.sum(p, axis=-1, keepdims=True), approx=True)

        a = jnp.dot(p.astype(jnp.bfloat16), v.astype(jnp.bfloat16),
                    preferred_element_type=jnp.float32)              # (BS, D) f32
        h = h + jnp.dot(a.astype(jnp.bfloat16), wo_ref[l],
                        preferred_element_type=jnp.float32)

        # ---- pre-norm + SwiGLU FFN + residual ----
        y2 = rmsnorm(h).astype(jnp.bfloat16)                         # (BS, D)
        u = jnp.dot(y2, w13_ref[l, 0], preferred_element_type=jnp.float32)  # (BS, F)
        g = jnp.dot(y2, w13_ref[l, 1], preferred_element_type=jnp.float32)  # (BS, F)
        ff = (u * jax.nn.sigmoid(u) * g).astype(jnp.bfloat16)        # SiLU(u) * g
        h = h + jnp.dot(ff, w2_ref[l], preferred_element_type=jnp.float32)

    # ---- final fc (nn.Linear) ----
    out = jnp.dot(h.astype(jnp.bfloat16), wfc_ref[...],
                  preferred_element_type=jnp.float32) + bfc_ref[...]
    o_ref[...] = out.astype(o_ref.dtype)                             # (BS, D)


@jax.jit
def magformer_forward(x, params):
    B, S, D = x.shape
    (pos_flat, mask, wqkv, wo, w13, w2, wfc, bfc) = params
    F = w2.shape[1]
    BS = B * S
    x_flat = x.reshape(BS, D)

    flops = (N_LAYERS * (3 * 2 * BS * D * D       # Q, K, V projections
                         + 2 * 2 * BS * BS * D    # scores + attn*V
                         + 2 * BS * D * D         # output projection
                         + 2 * 2 * BS * D * F     # gate + up
                         + 2 * BS * F * D)        # down projection
             + 2 * BS * D * D)                    # final fc
    transcendentals = N_LAYERS * (BS * BS + BS * F + 2 * BS)
    bytes_accessed = (sum(int(a.size) * a.dtype.itemsize for a in (x,) + tuple(params))
                      + BS * D * 4)

    vmem_spec = pl.BlockSpec(memory_space=pltpu.MemorySpace.VMEM)
    kernel = pl.pallas_call(
        _magformer_kernel,
        out_shape=jax.ShapeDtypeStruct((BS, D), jnp.float32),
        in_specs=[vmem_spec] * 9,
        out_specs=vmem_spec,
        cost_estimate=pl.CostEstimate(
            flops=int(flops),
            transcendentals=int(transcendentals),
            bytes_accessed=int(bytes_accessed)),
    )
    out_flat = kernel(x_flat, pos_flat, mask, wqkv, wo, w13, w2, wfc, bfc)
    return out_flat.reshape(B, S, D)


def make_params(key, B, S, D, F):
    """Deterministic synthetic parameter init (this is not a checkpoint load)."""
    ks = jax.random.split(key, 8)
    scale_d = 1.0 / math.sqrt(D)
    scale_f = 1.0 / math.sqrt(F)

    # sinusoidal "joint" positional encoding table (S, D), pre-tiled over batch
    pos_idx = jnp.arange(S, dtype=jnp.float32)[:, None]
    dim_idx = jnp.arange(D // 2, dtype=jnp.float32)[None, :]
    inv_freq = jnp.exp(-math.log(10000.0) * (2.0 * dim_idx) / D)
    ang = pos_idx * inv_freq
    pos = jnp.concatenate([jnp.sin(ang), jnp.cos(ang)], axis=-1)     # (S, D) f32
    pos_flat = jnp.tile(pos, (B, 1))                                 # (B*S, D) f32

    # block-diagonal attention mask over the flat (B*S) axis
    batch_id = jnp.repeat(jnp.arange(B), S)
    mask = jnp.where(batch_id[:, None] == batch_id[None, :],
                     0.0, -1e30).astype(jnp.float32)                 # (BS, BS) f32

    # RMSNorm weights (PyTorch default: ones); folded into the following linears.
    g1 = jnp.ones((N_LAYERS, D), jnp.float32)
    g2 = jnp.ones((N_LAYERS, D), jnp.float32)

    wq = jax.random.normal(ks[0], (N_LAYERS, D, D), jnp.float32) * scale_d
    wk = jax.random.normal(ks[1], (N_LAYERS, D, D), jnp.float32) * scale_d
    wv = jax.random.normal(ks[2], (N_LAYERS, D, D), jnp.float32) * scale_d
    wo = jax.random.normal(ks[3], (N_LAYERS, D, D), jnp.float32) * scale_d
    w1 = jax.random.normal(ks[4], (N_LAYERS, D, F), jnp.float32) * scale_d
    w3 = jax.random.normal(ks[5], (N_LAYERS, D, F), jnp.float32) * scale_d
    w2 = jax.random.normal(ks[6], (N_LAYERS, F, D), jnp.float32) * scale_f
    wfc = jax.random.normal(ks[7], (D, D), jnp.float32) * scale_d
    bfc = jnp.zeros((1, D), jnp.float32)

    # Fold gammas: (v*inv_rms*gamma) @ W == (v*inv_rms) @ (diag(gamma) @ W)
    wq = wq * g1[:, :, None]
    wk = wk * g1[:, :, None]
    wv = wv * g1[:, :, None]
    w1 = w1 * g2[:, :, None]
    w3 = w3 * g2[:, :, None]

    # Stacked bf16 weights; indexed per-layer with static indices (no lane slicing).
    wqkv = jnp.stack([wq, wk, wv], axis=1).astype(jnp.bfloat16)      # (L, 3, D, D)
    w13 = jnp.stack([w1, w3], axis=1).astype(jnp.bfloat16)           # (L, 2, D, F)
    wo_b = wo.astype(jnp.bfloat16)                                   # (L, D, D)
    w2_b = w2.astype(jnp.bfloat16)                                   # (L, F, D)
    wfc_b = wfc.astype(jnp.bfloat16)                                 # (D, D)

    return (pos_flat, mask, wqkv, wo_b, w13, w2_b, wfc_b, bfc)


if __name__ == "__main__":
    B, S_half, D, F = 2, 8, 32, 64
    key = jax.random.PRNGKey(0)
    k_in, k_par = jax.random.split(key)

    # MagFormer concatenates vae_recons and image_recons along seq (dim=-2):
    k1, k2 = jax.random.split(k_in)
    vae_recons = jax.random.normal(k1, (B, S_half, D), jnp.float32)
    image_recons = jax.random.normal(k2, (B, S_half, D), jnp.float32)
    x = jnp.concatenate([vae_recons, image_recons], axis=-2)         # (B, 16, D)
    S = x.shape[1]

    params = make_params(k_par, B, S, D, F)

    out = magformer_forward(x, params)
    jax.block_until_ready(out)
    assert out.shape == (B, S, D)
    assert bool(jnp.all(jnp.isfinite(out)))
    print("KERNEL_OK")
</pallas_src>

<mosaic_0001>
module attributes {stable_mosaic.version = 11 : i64} {
  func.func @_magformer_kernel(%arg0: memref<32x32xf32, #tpu.memory_space<vmem>>, %arg1: memref<32x32xf32, #tpu.memory_space<vmem>>, %arg2: memref<32x32xf32, #tpu.memory_space<vmem>>, %arg3: memref<4x3x32x32xbf16, #tpu.memory_space<vmem>>, %arg4: memref<4x32x32xbf16, #tpu.memory_space<vmem>>, %arg5: memref<4x2x32x64xbf16, #tpu.memory_space<vmem>>, %arg6: memref<4x64x32xbf16, #tpu.memory_space<vmem>>, %arg7: memref<32x32xbf16, #tpu.memory_space<vmem>>, %arg8: memref<1x32xf32, #tpu.memory_space<vmem>>, %arg9: memref<32x32xf32, #tpu.memory_space<vmem>>) attributes {dimension_semantics = [], scalar_prefetch = 0 : i64, scratch_operands = 0 : i64, tpu.core_type = #tpu.core_type<tc>} {
    %c0 = arith.constant 0 : index
    %c0_0 = arith.constant 0 : index
    %0 = vector.load %arg0[%c0, %c0_0] : memref<32x32xf32, #tpu.memory_space<vmem>>, vector<32x32xf32>
    %c0_1 = arith.constant 0 : index
    %c0_2 = arith.constant 0 : index
    %1 = vector.load %arg1[%c0_1, %c0_2] : memref<32x32xf32, #tpu.memory_space<vmem>>, vector<32x32xf32>
    %2 = arith.addf %0, %1 : vector<32x32xf32>
    %c0_3 = arith.constant 0 : index
    %c0_4 = arith.constant 0 : index
    %3 = vector.load %arg2[%c0_3, %c0_4] : memref<32x32xf32, #tpu.memory_space<vmem>>, vector<32x32xf32>
    %4 = arith.mulf %2, %2 : vector<32x32xf32>
    %cst = arith.constant dense<0.000000e+00> : vector<32xf32>
    %5 = vector.multi_reduction <add>, %4, %cst [1] : vector<32x32xf32> to vector<32xf32>
    %6 = vector.shape_cast %5 : vector<32xf32> to vector<32x1xf32>
    %cst_5 = arith.constant 3.200000e+01 : f32
    %7 = vector.broadcast %cst_5 : f32 to vector<32x1xf32>
    %8 = arith.divf %6, %7 : vector<32x1xf32>
    %cst_6 = arith.constant 9.99999997E-7 : f32
    %9 = vector.broadcast %cst_6 : f32 to vector<32x1xf32>
    %10 = arith.addf %8, %9 : vector<32x1xf32>
    %11 = math.rsqrt %10 : vector<32x1xf32>
    %12 = vector.broadcast %11 : vector<32x1xf32> to vector<32x32xf32>
    %13 = arith.mulf %2, %12 : vector<32x32xf32>
    %14 = arith.truncf %13 : vector<32x32xf32> to vector<32x32xbf16>
    %c0_7 = arith.constant 0 : index
    %c0_8 = arith.constant 0 : index
    %c0_9 = arith.constant 0 : index
    %c0_10 = arith.constant 0 : index
    %15 = vector.load %arg3[%c0_7, %c0_8, %c0_9, %c0_10] : memref<4x3x32x32xbf16, #tpu.memory_space<vmem>>, vector<1x1x32x32xbf16>
    %16 = vector.shape_cast %15 : vector<1x1x32x32xbf16> to vector<32x32xbf16>
    %cst_11 = arith.constant dense<0.000000e+00> : vector<32x32xf32>
    %17 = tpu.matmul %14, %16, %cst_11 {dimension_numbers = #tpu.dot_dimension_numbers<[1], [0], [0], [1], [0, 0, 1, 1], [], []>} : vector<32x32xbf16>, vector<32x32xbf16>, vector<32x32xf32> -> vector<32x32xf32>
    %c0_12 = arith.constant 0 : index
    %c1 = arith.constant 1 : index
    %c0_13 = arith.constant 0 : index
    %c0_14 = arith.constant 0 : index
    %18 = vector.load %arg3[%c0_12, %c1, %c0_13, %c0_14] : memref<4x3x32x32xbf16, #tpu.memory_space<vmem>>, vector<1x1x32x32xbf16>
    %19 = vector.shape_cast %18 : vector<1x1x32x32xbf16> to vector<32x32xbf16>
    %cst_15 = arith.constant dense<0.000000e+00> : vector<32x32xf32>
    %20 = tpu.matmul %14, %19, %cst_15 {dimension_numbers = #tpu.dot_dimension_numbers<[1], [0], [0], [1], [0, 0, 1, 1], [], []>} : vector<32x32xbf16>, vector<32x32xbf16>, vector<32x32xf32> -> vector<32x32xf32>
    %c0_16 = arith.constant 0 : index
    %c2 = arith.constant 2 : index
    %c0_17 = arith.constant 0 : index
    %c0_18 = arith.constant 0 : index
    %21 = vector.load %arg3[%c0_16, %c2, %c0_17, %c0_18] : memref<4x3x32x32xbf16, #tpu.memory_space<vmem>>, vector<1x1x32x32xbf16>
    %22 = vector.shape_cast %21 : vector<1x1x32x32xbf16> to vector<32x32xbf16>
    %cst_19 = arith.constant dense<0.000000e+00> : vector<32x32xf32>
    %23 = tpu.matmul %14, %22, %cst_19 {dimension_numbers = #tpu.dot_dimension_numbers<[1], [0], [0], [1], [0, 0, 1, 1], [], []>} : vector<32x32xbf16>, vector<32x32xbf16>, vector<32x32xf32> -> vector<32x32xf32>
    %24 = arith.truncf %17 : vector<32x32xf32> to vector<32x32xbf16>
    %25 = arith.truncf %20 : vector<32x32xf32> to vector<32x32xbf16>
    %cst_20 = arith.constant dense<0.000000e+00> : vector<32x32xf32>
    %26 = tpu.matmul %24, %25, %cst_20 {dimension_numbers = #tpu.dot_dimension_numbers<[1], [1], [0], [0], [0, 0, 1, 0], [], []>} : vector<32x32xbf16>, vector<32x32xbf16>, vector<32x32xf32> -> vector<32x32xf32>
    %cst_21 = arith.constant 0.176776692 : f32
    %27 = vector.broadcast %cst_21 : f32 to vector<32x32xf32>
    %28 = arith.mulf %26, %27 : vector<32x32xf32>
    %29 = arith.addf %28, %3 : vector<32x32xf32>
    %cst_22 = arith.constant dense<0xFF800000> : vector<32xf32>
    %30 = vector.multi_reduction <maximumf>, %29, %cst_22 [1] : vector<32x32xf32> to vector<32xf32>
    %31 = vector.shape_cast %30 : vector<32xf32> to vector<32x1xf32>
    %32 = vector.broadcast %31 : vector<32x1xf32> to vector<32x32xf32>
    %33 = arith.subf %29, %32 : vector<32x32xf32>
    %34 = math.exp %33 : vector<32x32xf32>
    %cst_23 = arith.constant dense<0.000000e+00> : vector<32xf32>
    %35 = vector.multi_reduction <add>, %34, %cst_23 [1] : vector<32x32xf32> to vector<32xf32>
    %36 = vector.shape_cast %35 : vector<32xf32> to vector<32x1xf32>
    %37 = tpu.reciprocal %36 {approx = true} : vector<32x1xf32> -> vector<32x1xf32>
    %38 = vector.broadcast %37 : vector<32x1xf32> to vector<32x32xf32>
    %39 = arith.mulf %34, %38 : vector<32x32xf32>
    %40 = arith.truncf %39 : vector<32x32xf32> to vector<32x32xbf16>
    %41 = arith.truncf %23 : vector<32x32xf32> to vector<32x32xbf16>
    %cst_24 = arith.constant dense<0.000000e+00> : vector<32x32xf32>
    %42 = tpu.matmul %40, %41, %cst_24 {dimension_numbers = #tpu.dot_dimension_numbers<[1], [0], [0], [1], [0, 0, 1, 1], [], []>} : vector<32x32xbf16>, vector<32x32xbf16>, vector<32x32xf32> -> vector<32x32xf32>
    %43 = arith.truncf %42 : vector<32x32xf32> to vector<32x32xbf16>
    %c0_25 = arith.constant 0 : index
    %c0_26 = arith.constant 0 : index
    %c0_27 = arith.constant 0 : index
    %44 = vector.load %arg4[%c0_25, %c0_26, %c0_27] : memref<4x32x32xbf16, #tpu.memory_space<vmem>>, vector<1x32x32xbf16>
    %45 = vector.shape_cast %44 : vector<1x32x32xbf16> to vector<32x32xbf16>
    %cst_28 = arith.constant dense<0.000000e+00> : vector<32x32xf32>
    %46 = tpu.matmul %43, %45, %cst_28 {dimension_numbers = #tpu.dot_dimension_numbers<[1], [0], [0], [1], [0, 0, 1, 1], [], []>} : vector<32x32xbf16>, vector<32x32xbf16>, vector<32x32xf32> -> vector<32x32xf32>
    %47 = arith.addf %2, %46 : vector<32x32xf32>
    %48 = arith.mulf %47, %47 : vector<32x32xf32>
    %cst_29 = arith.constant dense<0.000000e+00> : vector<32xf32>
    %49 = vector.multi_reduction <add>, %48, %cst_29 [1] : vector<32x32xf32> to vector<32xf32>
    %50 = vector.shape_cast %49 : vector<32xf32> to vector<32x1xf32>
    %cst_30 = arith.constant 3.200000e+01 : f32
    %51 = vector.broadcast %cst_30 : f32 to vector<32x1xf32>
    %52 = arith.divf %50, %51 : vector<32x1xf32>
    %cst_31 = arith.constant 9.99999997E-7 : f32
    %53 = vector.broadcast %cst_31 : f32 to vector<32x1xf32>
    %54 = arith.addf %52, %53 : vector<32x1xf32>
    %55 = math.rsqrt %54 : vector<32x1xf32>
    %56 = vector.broadcast %55 : vector<32x1xf32> to vector<32x32xf32>
    %57 = arith.mulf %47, %56 : vector<32x32xf32>
    %58 = arith.truncf %57 : vector<32x32xf32> to vector<32x32xbf16>
    %c0_32 = arith.constant 0 : index
    %c0_33 = arith.constant 0 : index
    %c0_34 = arith.constant 0 : index
    %c0_35 = arith.constant 0 : index
    %59 = vector.load %arg5[%c0_32, %c0_33, %c0_34, %c0_35] : memref<4x2x32x64xbf16, #tpu.memory_space<vmem>>, vector<1x1x32x64xbf16>
    %60 = vector.shape_cast %59 : vector<1x1x32x64xbf16> to vector<32x64xbf16>
    %cst_36 = arith.constant dense<0.000000e+00> : vector<32x64xf32>
    %61 = tpu.matmul %58, %60, %cst_36 {dimension_numbers = #tpu.dot_dimension_numbers<[1], [0], [0], [1], [0, 0, 1, 1], [], []>} : vector<32x32xbf16>, vector<32x64xbf16>, vector<32x64xf32> -> vector<32x64xf32>
    %c0_37 = arith.constant 0 : index
    %c1_38 = arith.constant 1 : index
    %c0_39 = arith.constant 0 : index
    %c0_40 = arith.constant 0 : index
    %62 = vector.load %arg5[%c0_37, %c1_38, %c0_39, %c0_40] : memref<4x2x32x64xbf16, #tpu.memory_space<vmem>>, vector<1x1x32x64xbf16>
    %63 = vector.shape_cast %62 : vector<1x1x32x64xbf16> to vector<32x64xbf16>
    %cst_41 = arith.constant dense<0.000000e+00> : vector<32x64xf32>
    %64 = tpu.matmul %58, %63, %cst_41 {dimension_numbers = #tpu.dot_dimension_numbers<[1], [0], [0], [1], [0, 0, 1, 1], [], []>} : vector<32x32xbf16>, vector<32x64xbf16>, vector<32x64xf32> -> vector<32x64xf32>
    %65 = arith.negf %61 : vector<32x64xf32>
    %66 = math.exp %65 : vector<32x64xf32>
    %cst_42 = arith.constant 1.000000e+00 : f32
    %67 = vector.broadcast %cst_42 : f32 to vector<32x64xf32>
    %68 = arith.addf %67, %66 : vector<32x64xf32>
    %69 = arith.divf %67, %68 : vector<32x64xf32>
    %70 = arith.mulf %61, %69 : vector<32x64xf32>
    %71 = arith.mulf %70, %64 : vector<32x64xf32>
    %72 = arith.truncf %71 : vector<32x64xf32> to vector<32x64xbf16>
    %c0_43 = arith.constant 0 : index
    %c0_44 = arith.constant 0 : index
    %c0_45 = arith.constant 0 : index
    %73 = vector.load %arg6[%c0_43, %c0_44, %c0_45] : memref<4x64x32xbf16, #tpu.memory_space<vmem>>, vector<1x64x32xbf16>
    %74 = vector.shape_cast %73 : vector<1x64x32xbf16> to vector<64x32xbf16>
    %cst_46 = arith.constant dense<0.000000e+00> : vector<32x32xf32>
    %75 = tpu.matmul %72, %74, %cst_46 {dimension_numbers = #tpu.dot_dimension_numbers<[1], [0], [0], [1], [0, 0, 1, 1], [], []>} : vector<32x64xbf16>, vector<64x32xbf16>, vector<32x32xf32> -> vector<32x32xf32>
    %76 = arith.addf %47, %75 : vector<32x32xf32>
    %77 = arith.mulf %76, %76 : vector<32x32xf32>
    %cst_47 = arith.constant dense<0.000000e+00> : vector<32xf32>
    %78 = vector.multi_reduction <add>, %77, %cst_47 [1] : vector<32x32xf32> to vector<32xf32>
    %79 = vector.shape_cast %78 : vector<32xf32> to vector<32x1xf32>
    %cst_48 = arith.constant 3.200000e+01 : f32
    %80 = vector.broadcast %cst_48 : f32 to vector<32x1xf32>
    %81 = arith.divf %79, %80 : vector<32x1xf32>
    %cst_49 = arith.constant 9.99999997E-7 : f32
    %82 = vector.broadcast %cst_49 : f32 to vector<32x1xf32>
    %83 = arith.addf %81, %82 : vector<32x1xf32>
    %84 = math.rsqrt %83 : vector<32x1xf32>
    %85 = vector.broadcast %84 : vector<32x1xf32> to vector<32x32xf32>
    %86 = arith.mulf %76, %85 : vector<32x32xf32>
    %87 = arith.truncf %86 : vector<32x32xf32> to vector<32x32xbf16>
    %c1_50 = arith.constant 1 : index
    %c0_51 = arith.constant 0 : index
    %c0_52 = arith.constant 0 : index
    %c0_53 = arith.constant 0 : index
    %88 = vector.load %arg3[%c1_50, %c0_51, %c0_52, %c0_53] : memref<4x3x32x32xbf16, #tpu.memory_space<vmem>>, vector<1x1x32x32xbf16>
    %89 = vector.shape_cast %88 : vector<1x1x32x32xbf16> to vector<32x32xbf16>
    %cst_54 = arith.constant dense<0.000000e+00> : vector<32x32xf32>
    %90 = tpu.matmul %87, %89, %cst_54 {dimension_numbers = #tpu.dot_dimension_numbers<[1], [0], [0], [1], [0, 0, 1, 1], [], []>} : vector<32x32xbf16>, vector<32x32xbf16>, vector<32x32xf32> -> vector<32x32xf32>
    %c1_55 = arith.constant 1 : index
    %c1_56 = arith.constant 1 : index
    %c0_57 = arith.constant 0 : index
    %c0_58 = arith.constant 0 : index
    %91 = vector.load %arg3[%c1_55, %c1_56, %c0_57, %c0_58] : memref<4x3x32x32xbf16, #tpu.memory_space<vmem>>, vector<1x1x32x32xbf16>
    %92 = vector.shape_cast %91 : vector<1x1x32x32xbf16> to vector<32x32xbf16>
    %cst_59 = arith.constant dense<0.000000e+00> : vector<32x32xf32>
    %93 = tpu.matmul %87, %92, %cst_59 {dimension_numbers = #tpu.dot_dimension_numbers<[1], [0], [0], [1], [0, 0, 1, 1], [], []>} : vector<32x32xbf16>, vector<32x32xbf16>, vector<32x32xf32> -> vector<32x32xf32>
    %c1_60 = arith.constant 1 : index
    %c2_61 = arith.constant 2 : index
    %c0_62 = arith.constant 0 : index
    %c0_63 = arith.constant 0 : index
    %94 = vector.load %arg3[%c1_60, %c2_61, %c0_62, %c0_63] : memref<4x3x32x32xbf16, #tpu.memory_space<vmem>>, vector<1x1x32x32xbf16>
    %95 = vector.shape_cast %94 : vector<1x1x32x32xbf16> to vector<32x32xbf16>
    %cst_64 = arith.constant dense<0.000000e+00> : vector<32x32xf32>
    %96 = tpu.matmul %87, %95, %cst_64 {dimension_numbers = #tpu.dot_dimension_numbers<[1], [0], [0], [1], [0, 0, 1, 1], [], []>} : vector<32x32xbf16>, vector<32x32xbf16>, vector<32x32xf32> -> vector<32x32xf32>
    %97 = arith.truncf %90 : vector<32x32xf32> to vector<32x32xbf16>
    %98 = arith.truncf %93 : vector<32x32xf32> to vector<32x32xbf16>
    %cst_65 = arith.constant dense<0.000000e+00> : vector<32x32xf32>
    %99 = tpu.matmul %97, %98, %cst_65 {dimension_numbers = #tpu.dot_dimension_numbers<[1], [1], [0], [0], [0, 0, 1, 0], [], []>} : vector<32x32xbf16>, vector<32x32xbf16>, vector<32x32xf32> -> vector<32x32xf32>
    %cst_66 = arith.constant 0.176776692 : f32
    %100 = vector.broadcast %cst_66 : f32 to vector<32x32xf32>
    %101 = arith.mulf %99, %100 : vector<32x32xf32>
    %102 = arith.addf %101, %3 : vector<32x32xf32>
    %cst_67 = arith.constant dense<0xFF800000> : vector<32xf32>
    %103 = vector.multi_reduction <maximumf>, %102, %cst_67 [1] : vector<32x32xf32> to vector<32xf32>
    %104 = vector.shape_cast %103 : vector<32xf32> to vector<32x1xf32>
    %105 = vector.broadcast %104 : vector<32x1xf32> to vector<32x32xf32>
    %106 = arith.subf %102, %105 : vector<32x32xf32>
    %107 = math.exp %106 : vector<32x32xf32>
    %cst_68 = arith.constant dense<0.000000e+00> : vector<32xf32>
    %108 = vector.multi_reduction <add>, %107, %cst_68 [1] : vector<32x32xf32> to vector<32xf32>
    %109 = vector.shape_cast %108 : vector<32xf32> to vector<32x1xf32>
    %110 = tpu.reciprocal %109 {approx = true} : vector<32x1xf32> -> vector<32x1xf32>
    %111 = vector.broadcast %110 : vector<32x1xf32> to vector<32x32xf32>
    %112 = arith.mulf %107, %111 : vector<32x32xf32>
    %113 = arith.truncf %112 : vector<32x32xf32> to vector<32x32xbf16>
    %114 = arith.truncf %96 : vector<32x32xf32> to vector<32x32xbf16>
    %cst_69 = arith.constant dense<0.000000e+00> : vector<32x32xf32>
    %115 = tpu.matmul %113, %114, %cst_69 {dimension_numbers = #tpu.dot_dimension_numbers<[1], [0], [0], [1], [0, 0, 1, 1], [], []>} : vector<32x32xbf16>, vector<32x32xbf16>, vector<32x32xf32> -> vector<32x32xf32>
    %116 = arith.truncf %115 : vector<32x32xf32> to vector<32x32xbf16>
    %c1_70 = arith.constant 1 : index
    %c0_71 = arith.constant 0 : index
    %c0_72 = arith.constant 0 : index
    %117 = vector.load %arg4[%c1_70, %c0_71, %c0_72] : memref<4x32x32xbf16, #tpu.memory_space<vmem>>, vector<1x32x32xbf16>
    %118 = vector.shape_cast %117 : vector<1x32x32xbf16> to vector<32x32xbf16>
    %cst_73 = arith.constant dense<0.000000e+00> : vector<32x32xf32>
    %119 = tpu.matmul %116, %118, %cst_73 {dimension_numbers = #tpu.dot_dimension_numbers<[1], [0], [0], [1], [0, 0, 1, 1], [], []>} : vector<32x32xbf16>, vector<32x32xbf16>, vector<32x32xf32> -> vector<32x32xf32>
    %120 = arith.addf %76, %119 : vector<32x32xf32>
    %121 = arith.mulf %120, %120 : vector<32x32xf32>
    %cst_74 = arith.constant dense<0.000000e+00> : vector<32xf32>
    %122 = vector.multi_reduction <add>, %121, %cst_74 [1] : vector<32x32xf32> to vector<32xf32>
    %123 = vector.shape_cast %122 : vector<32xf32> to vector<32x1xf32>
    %cst_75 = arith.constant 3.200000e+01 : f32
    %124 = vector.broadcast %cst_75 : f32 to vector<32x1xf32>
    %125 = arith.divf %123, %124 : vector<32x1xf32>
    %cst_76 = arith.constant 9.99999997E-7 : f32
    %126 = vector.broadcast %cst_76 : f32 to vector<32x1xf32>
    %127 = arith.addf %125, %126 : vector<32x1xf32>
    %128 = math.rsqrt %127 : vector<32x1xf32>
    %129 = vector.broadcast %128 : vector<32x1xf32> to vector<32x32xf32>
    %130 = arith.mulf %120, %129 : vector<32x32xf32>
    %131 = arith.truncf %130 : vector<32x32xf32> to vector<32x32xbf16>
    %c1_77 = arith.constant 1 : index
    %c0_78 = arith.constant 0 : index
    %c0_79 = arith.constant 0 : index
    %c0_80 = arith.constant 0 : index
    %132 = vector.load %arg5[%c1_77, %c0_78, %c0_79, %c0_80] : memref<4x2x32x64xbf16, #tpu.memory_space<vmem>>, vector<1x1x32x64xbf16>
    %133 = vector.shape_cast %132 : vector<1x1x32x64xbf16> to vector<32x64xbf16>
    %cst_81 = arith.constant dense<0.000000e+00> : vector<32x64xf32>
    %134 = tpu.matmul %131, %133, %cst_81 {dimension_numbers = #tpu.dot_dimension_numbers<[1], [0], [0], [1], [0, 0, 1, 1], [], []>} : vector<32x32xbf16>, vector<32x64xbf16>, vector<32x64xf32> -> vector<32x64xf32>
    %c1_82 = arith.constant 1 : index
    %c1_83 = arith.constant 1 : index
    %c0_84 = arith.constant 0 : index
    %c0_85 = arith.constant 0 : index
    %135 = vector.load %arg5[%c1_82, %c1_83, %c0_84, %c0_85] : memref<4x2x32x64xbf16, #tpu.memory_space<vmem>>, vector<1x1x32x64xbf16>
    %136 = vector.shape_cast %135 : vector<1x1x32x64xbf16> to vector<32x64xbf16>
    %cst_86 = arith.constant dense<0.000000e+00> : vector<32x64xf32>
    %137 = tpu.matmul %131, %136, %cst_86 {dimension_numbers = #tpu.dot_dimension_numbers<[1], [0], [0], [1], [0, 0, 1, 1], [], []>} : vector<32x32xbf16>, vector<32x64xbf16>, vector<32x64xf32> -> vector<32x64xf32>
    %138 = arith.negf %134 : vector<32x64xf32>
    %139 = math.exp %138 : vector<32x64xf32>
    %cst_87 = arith.constant 1.000000e+00 : f32
    %140 = vector.broadcast %cst_87 : f32 to vector<32x64xf32>
    %141 = arith.addf %140, %139 : vector<32x64xf32>
    %142 = arith.divf %140, %141 : vector<32x64xf32>
    %143 = arith.mulf %134, %142 : vector<32x64xf32>
    %144 = arith.mulf %143, %137 : vector<32x64xf32>
    %145 = arith.truncf %144 : vector<32x64xf32> to vector<32x64xbf16>
    %c1_88 = arith.constant 1 : index
    %c0_89 = arith.constant 0 : index
    %c0_90 = arith.constant 0 : index
    %146 = vector.load %arg6[%c1_88, %c0_89, %c0_90] : memref<4x64x32xbf16, #tpu.memory_space<vmem>>, vector<1x64x32xbf16>
    %147 = vector.shape_cast %146 : vector<1x64x32xbf16> to vector<64x32xbf16>
    %cst_91 = arith.constant dense<0.000000e+00> : vector<32x32xf32>
    %148 = tpu.matmul %145, %147, %cst_91 {dimension_numbers = #tpu.dot_dimension_numbers<[1], [0], [0], [1], [0, 0, 1, 1], [], []>} : vector<32x64xbf16>, vector<64x32xbf16>, vector<32x32xf32> -> vector<32x32xf32>
    %149 = arith.addf %120, %148 : vector<32x32xf32>
    %150 = arith.mulf %149, %149 : vector<32x32xf32>
    %cst_92 = arith.constant dense<0.000000e+00> : vector<32xf32>
    %151 = vector.multi_reduction <add>, %150, %cst_92 [1] : vector<32x32xf32> to vector<32xf32>
    %152 = vector.shape_cast %151 : vector<32xf32> to vector<32x1xf32>
    %cst_93 = arith.constant 3.200000e+01 : f32
    %153 = vector.broadcast %cst_93 : f32 to vector<32x1xf32>
    %154 = arith.divf %152, %153 : vector<32x1xf32>
    %cst_94 = arith.constant 9.99999997E-7 : f32
    %155 = vector.broadcast %cst_94 : f32 to vector<32x1xf32>
    %156 = arith.addf %154, %155 : vector<32x1xf32>
    %157 = math.rsqrt %156 : vector<32x1xf32>
    %158 = vector.broadcast %157 : vector<32x1xf32> to vector<32x32xf32>
    %159 = arith.mulf %149, %158 : vector<32x32xf32>
    %160 = arith.truncf %159 : vector<32x32xf32> to vector<32x32xbf16>
    %c2_95 = arith.constant 2 : index
    %c0_96 = arith.constant 0 : index
    %c0_97 = arith.constant 0 : index
    %c0_98 = arith.constant 0 : index
    %161 = vector.load %arg3[%c2_95, %c0_96, %c0_97, %c0_98] : memref<4x3x32x32xbf16, #tpu.memory_space<vmem>>, vector<1x1x32x32xbf16>
    %162 = vector.shape_cast %161 : vector<1x1x32x32xbf16> to vector<32x32xbf16>
    %cst_99 = arith.constant dense<0.000000e+00> : vector<32x32xf32>
    %163 = tpu.matmul %160, %162, %cst_99 {dimension_numbers = #tpu.dot_dimension_numbers<[1], [0], [0], [1], [0, 0, 1, 1], [], []>} : vector<32x32xbf16>, vector<32x32xbf16>, vector<32x32xf32> -> vector<32x32xf32>
    %c2_100 = arith.constant 2 : index
    %c1_101 = arith.constant 1 : index
    %c0_102 = arith.constant 0 : index
    %c0_103 = arith.constant 0 : index
    %164 = vector.load %arg3[%c2_100, %c1_101, %c0_102, %c0_103] : memref<4x3x32x32xbf16, #tpu.memory_space<vmem>>, vector<1x1x32x32xbf16>
    %165 = vector.shape_cast %164 : vector<1x1x32x32xbf16> to vector<32x32xbf16>
    %cst_104 = arith.constant dense<0.000000e+00> : vector<32x32xf32>
    %166 = tpu.matmul %160, %165, %cst_104 {dimension_numbers = #tpu.dot_dimension_numbers<[1], [0], [0], [1], [0, 0, 1, 1], [], []>} : vector<32x32xbf16>, vector<32x32xbf16>, vector<32x32xf32> -> vector<32x32xf32>
    %c2_105 = arith.constant 2 : index
    %c2_106 = arith.constant 2 : index
    %c0_107 = arith.constant 0 : index
    %c0_108 = arith.constant 0 : index
    %167 = vector.load %arg3[%c2_105, %c2_106, %c0_107, %c0_108] : memref<4x3x32x32xbf16, #tpu.memory_space<vmem>>, vector<1x1x32x32xbf16>
    %168 = vector.shape_cast %167 : vector<1x1x32x32xbf16> to vector<32x32xbf16>
    %cst_109 = arith.constant dense<0.000000e+00> : vector<32x32xf32>
    %169 = tpu.matmul %160, %168, %cst_109 {dimension_numbers = #tpu.dot_dimension_numbers<[1], [0], [0], [1], [0, 0, 1, 1], [], []>} : vector<32x32xbf16>, vector<32x32xbf16>, vector<32x32xf32> -> vector<32x32xf32>
    %170 = arith.truncf %163 : vector<32x32xf32> to vector<32x32xbf16>
    %171 = arith.truncf %166 : vector<32x32xf32> to vector<32x32xbf16>
    %cst_110 = arith.constant dense<0.000000e+00> : vector<32x32xf32>
    %172 = tpu.matmul %170, %171, %cst_110 {dimension_numbers = #tpu.dot_dimension_numbers<[1], [1], [0], [0], [0, 0, 1, 0], [], []>} : vector<32x32xbf16>, vector<32x32xbf16>, vector<32x32xf32> -> vector<32x32xf32>
    %cst_111 = arith.constant 0.176776692 : f32
    %173 = vector.broadcast %cst_111 : f32 to vector<32x32xf32>
    %174 = arith.mulf %172, %173 : vector<32x32xf32>
    %175 = arith.addf %174, %3 : vector<32x32xf32>
    %cst_112 = arith.constant dense<0xFF800000> : vector<32xf32>
    %176 = vector.multi_reduction <maximumf>, %175, %cst_112 [1] : vector<32x32xf32> to vector<32xf32>
    %177 = vector.shape_cast %176 : vector<32xf32> to vector<32x1xf32>
    %178 = vector.broadcast %177 : vector<32x1xf32> to vector<32x32xf32>
    %179 = arith.subf %175, %178 : vector<32x32xf32>
    %180 = math.exp %179 : vector<32x32xf32>
    %cst_113 = arith.constant dense<0.000000e+00> : vector<32xf32>
    %181 = vector.multi_reduction <add>, %180, %cst_113 [1] : vector<32x32xf32> to vector<32xf32>
    %182 = vector.shape_cast %181 : vector<32xf32> to vector<32x1xf32>
    %183 = tpu.reciprocal %182 {approx = true} : vector<32x1xf32> -> vector<32x1xf32>
    %184 = vector.broadcast %183 : vector<32x1xf32> to vector<32x32xf32>
    %185 = arith.mulf %180, %184 : vector<32x32xf32>
    %186 = arith.truncf %185 : vector<32x32xf32> to vector<32x32xbf16>
    %187 = arith.truncf %169 : vector<32x32xf32> to vector<32x32xbf16>
    %cst_114 = arith.constant dense<0.000000e+00> : vector<32x32xf32>
    %188 = tpu.matmul %186, %187, %cst_114 {dimension_numbers = #tpu.dot_dimension_numbers<[1], [0], [0], [1], [0, 0, 1, 1], [], []>} : vector<32x32xbf16>, vector<32x32xbf16>, vector<32x32xf32> -> vector<32x32xf32>
    %189 = arith.truncf %188 : vector<32x32xf32> to vector<32x32xbf16>
    %c2_115 = arith.constant 2 : index
    %c0_116 = arith.constant 0 : index
    %c0_117 = arith.constant 0 : index
    %190 = vector.load %arg4[%c2_115, %c0_116, %c0_117] : memref<4x32x32xbf16, #tpu.memory_space<vmem>>, vector<1x32x32xbf16>
    %191 = vector.shape_cast %190 : vector<1x32x32xbf16> to vector<32x32xbf16>
    %cst_118 = arith.constant dense<0.000000e+00> : vector<32x32xf32>
    %192 = tpu.matmul %189, %191, %cst_118 {dimension_numbers = #tpu.dot_dimension_numbers<[1], [0], [0], [1], [0, 0, 1, 1], [], []>} : vector<32x32xbf16>, vector<32x32xbf16>, vector<32x32xf32> -> vector<32x32xf32>
    %193 = arith.addf %149, %192 : vector<32x32xf32>
    %194 = arith.mulf %193, %193 : vector<32x32xf32>
    %cst_119 = arith.constant dense<0.000000e+00> : vector<32xf32>
    %195 = vector.multi_reduction <add>, %194, %cst_119 [1] : vector<32x32xf32> to vector<32xf32>
    %196 = vector.shape_cast %195 : vector<32xf32> to vector<32x1xf32>
    %cst_120 = arith.constant 3.200000e+01 : f32
    %197 = vector.broadcast %cst_120 : f32 to vector<32x1xf32>
    %198 = arith.divf %196, %197 : vector<32x1xf32>
    %cst_121 = arith.constant 9.99999997E-7 : f32
    %199 = vector.broadcast %cst_121 : f32 to vector<32x1xf32>
    %200 = arith.addf %198, %199 : vector<32x1xf32>
    %201 = math.rsqrt %200 : vector<32x1xf32>
    %202 = vector.broadcast %201 : vector<32x1xf32> to vector<32x32xf32>
    %203 = arith.mulf %193, %202 : vector<32x32xf32>
    %204 = arith.truncf %203 : vector<32x32xf32> to vector<32x32xbf16>
    %c2_122 = arith.constant 2 : index
    %c0_123 = arith.constant 0 : index
    %c0_124 = arith.constant 0 : index
    %c0_125 = arith.constant 0 : index
    %205 = vector.load %arg5[%c2_122, %c0_123, %c0_124, %c0_125] : memref<4x2x32x64xbf16, #tpu.memory_space<vmem>>, vector<1x1x32x64xbf16>
    %206 = vector.shape_cast %205 : vector<1x1x32x64xbf16> to vector<32x64xbf16>
    %cst_126 = arith.constant dense<0.000000e+00> : vector<32x64xf32>
    %207 = tpu.matmul %204, %206, %cst_126 {dimension_numbers = #tpu.dot_dimension_numbers<[1], [0], [0], [1], [0, 0, 1, 1], [], []>} : vector<32x32xbf16>, vector<32x64xbf16>, vector<32x64xf32> -> vector<32x64xf32>
    %c2_127 = arith.constant 2 : index
    %c1_128 = arith.constant 1 : index
    %c0_129 = arith.constant 0 : index
    %c0_130 = arith.constant 0 : index
    %208 = vector.load %arg5[%c2_127, %c1_128, %c0_129, %c0_130] : memref<4x2x32x64xbf16, #tpu.memory_space<vmem>>, vector<1x1x32x64xbf16>
    %209 = vector.shape_cast %208 : vector<1x1x32x64xbf16> to vector<32x64xbf16>
    %cst_131 = arith.constant dense<0.000000e+00> : vector<32x64xf32>
    %210 = tpu.matmul %204, %209, %cst_131 {dimension_numbers = #tpu.dot_dimension_numbers<[1], [0], [0], [1], [0, 0, 1, 1], [], []>} : vector<32x32xbf16>, vector<32x64xbf16>, vector<32x64xf32> -> vector<32x64xf32>
    %211 = arith.negf %207 : vector<32x64xf32>
    %212 = math.exp %211 : vector<32x64xf32>
    %cst_132 = arith.constant 1.000000e+00 : f32
    %213 = vector.broadcast %cst_132 : f32 to vector<32x64xf32>
    %214 = arith.addf %213, %212 : vector<32x64xf32>
    %215 = arith.divf %213, %214 : vector<32x64xf32>
    %216 = arith.mulf %207, %215 : vector<32x64xf32>
    %217 = arith.mulf %216, %210 : vector<32x64xf32>
    %218 = arith.truncf %217 : vector<32x64xf32> to vector<32x64xbf16>
    %c2_133 = arith.constant 2 : index
    %c0_134 = arith.constant 0 : index
    %c0_135 = arith.constant 0 : index
    %219 = vector.load %arg6[%c2_133, %c0_134, %c0_135] : memref<4x64x32xbf16, #tpu.memory_space<vmem>>, vector<1x64x32xbf16>
    %220 = vector.shape_cast %219 : vector<1x64x32xbf16> to vector<64x32xbf16>
    %cst_136 = arith.constant dense<0.000000e+00> : vector<32x32xf32>
    %221 = tpu.matmul %218, %220, %cst_136 {dimension_numbers = #tpu.dot_dimension_numbers<[1], [0], [0], [1], [0, 0, 1, 1], [], []>} : vector<32x64xbf16>, vector<64x32xbf16>, vector<32x32xf32> -> vector<32x32xf32>
    %222 = arith.addf %193, %221 : vector<32x32xf32>
    %223 = arith.mulf %222, %222 : vector<32x32xf32>
    %cst_137 = arith.constant dense<0.000000e+00> : vector<32xf32>
    %224 = vector.multi_reduction <add>, %223, %cst_137 [1] : vector<32x32xf32> to vector<32xf32>
    %225 = vector.shape_cast %224 : vector<32xf32> to vector<32x1xf32>
    %cst_138 = arith.constant 3.200000e+01 : f32
    %226 = vector.broadcast %cst_138 : f32 to vector<32x1xf32>
    %227 = arith.divf %225, %226 : vector<32x1xf32>
    %cst_139 = arith.constant 9.99999997E-7 : f32
    %228 = vector.broadcast %cst_139 : f32 to vector<32x1xf32>
    %229 = arith.addf %227, %228 : vector<32x1xf32>
    %230 = math.rsqrt %229 : vector<32x1xf32>
    %231 = vector.broadcast %230 : vector<32x1xf32> to vector<32x32xf32>
    %232 = arith.mulf %222, %231 : vector<32x32xf32>
    %233 = arith.truncf %232 : vector<32x32xf32> to vector<32x32xbf16>
    %c3 = arith.constant 3 : index
    %c0_140 = arith.constant 0 : index
    %c0_141 = arith.constant 0 : index
    %c0_142 = arith.constant 0 : index
    %234 = vector.load %arg3[%c3, %c0_140, %c0_141, %c0_142] : memref<4x3x32x32xbf16, #tpu.memory_space<vmem>>, vector<1x1x32x32xbf16>
    %235 = vector.shape_cast %234 : vector<1x1x32x32xbf16> to vector<32x32xbf16>
    %cst_143 = arith.constant dense<0.000000e+00> : vector<32x32xf32>
    %236 = tpu.matmul %233, %235, %cst_143 {dimension_numbers = #tpu.dot_dimension_numbers<[1], [0], [0], [1], [0, 0, 1, 1], [], []>} : vector<32x32xbf16>, vector<32x32xbf16>, vector<32x32xf32> -> vector<32x32xf32>
    %c3_144 = arith.constant 3 : index
    %c1_145 = arith.constant 1 : index
    %c0_146 = arith.constant 0 : index
    %c0_147 = arith.constant 0 : index
    %237 = vector.load %arg3[%c3_144, %c1_145, %c0_146, %c0_147] : memref<4x3x32x32xbf16, #tpu.memory_space<vmem>>, vector<1x1x32x32xbf16>
    %238 = vector.shape_cast %237 : vector<1x1x32x32xbf16> to vector<32x32xbf16>
    %cst_148 = arith.constant dense<0.000000e+00> : vector<32x32xf32>
    %239 = tpu.matmul %233, %238, %cst_148 {dimension_numbers = #tpu.dot_dimension_numbers<[1], [0], [0], [1], [0, 0, 1, 1], [], []>} : vector<32x32xbf16>, vector<32x32xbf16>, vector<32x32xf32> -> vector<32x32xf32>
    %c3_149 = arith.constant 3 : index
    %c2_150 = arith.constant 2 : index
    %c0_151 = arith.constant 0 : index
    %c0_152 = arith.constant 0 : index
    %240 = vector.load %arg3[%c3_149, %c2_150, %c0_151, %c0_152] : memref<4x3x32x32xbf16, #tpu.memory_space<vmem>>, vector<1x1x32x32xbf16>
    %241 = vector.shape_cast %240 : vector<1x1x32x32xbf16> to vector<32x32xbf16>
    %cst_153 = arith.constant dense<0.000000e+00> : vector<32x32xf32>
    %242 = tpu.matmul %233, %241, %cst_153 {dimension_numbers = #tpu.dot_dimension_numbers<[1], [0], [0], [1], [0, 0, 1, 1], [], []>} : vector<32x32xbf16>, vector<32x32xbf16>, vector<32x32xf32> -> vector<32x32xf32>
    %243 = arith.truncf %236 : vector<32x32xf32> to vector<32x32xbf16>
    %244 = arith.truncf %239 : vector<32x32xf32> to vector<32x32xbf16>
    %cst_154 = arith.constant dense<0.000000e+00> : vector<32x32xf32>
    %245 = tpu.matmul %243, %244, %cst_154 {dimension_numbers = #tpu.dot_dimension_numbers<[1], [1], [0], [0], [0, 0, 1, 0], [], []>} : vector<32x32xbf16>, vector<32x32xbf16>, vector<32x32xf32> -> vector<32x32xf32>
    %cst_155 = arith.constant 0.176776692 : f32
    %246 = vector.broadcast %cst_155 : f32 to vector<32x32xf32>
    %247 = arith.mulf %245, %246 : vector<32x32xf32>
    %248 = arith.addf %247, %3 : vector<32x32xf32>
    %cst_156 = arith.constant dense<0xFF800000> : vector<32xf32>
    %249 = vector.multi_reduction <maximumf>, %248, %cst_156 [1] : vector<32x32xf32> to vector<32xf32>
    %250 = vector.shape_cast %249 : vector<32xf32> to vector<32x1xf32>
    %251 = vector.broadcast %250 : vector<32x1xf32> to vector<32x32xf32>
    %252 = arith.subf %248, %251 : vector<32x32xf32>
    %253 = math.exp %252 : vector<32x32xf32>
    %cst_157 = arith.constant dense<0.000000e+00> : vector<32xf32>
    %254 = vector.multi_reduction <add>, %253, %cst_157 [1] : vector<32x32xf32> to vector<32xf32>
    %255 = vector.shape_cast %254 : vector<32xf32> to vector<32x1xf32>
    %256 = tpu.reciprocal %255 {approx = true} : vector<32x1xf32> -> vector<32x1xf32>
    %257 = vector.broadcast %256 : vector<32x1xf32> to vector<32x32xf32>
    %258 = arith.mulf %253, %257 : vector<32x32xf32>
    %259 = arith.truncf %258 : vector<32x32xf32> to vector<32x32xbf16>
    %260 = arith.truncf %242 : vector<32x32xf32> to vector<32x32xbf16>
    %cst_158 = arith.constant dense<0.000000e+00> : vector<32x32xf32>
    %261 = tpu.matmul %259, %260, %cst_158 {dimension_numbers = #tpu.dot_dimension_numbers<[1], [0], [0], [1], [0, 0, 1, 1], [], []>} : vector<32x32xbf16>, vector<32x32xbf16>, vector<32x32xf32> -> vector<32x32xf32>
    %262 = arith.truncf %261 : vector<32x32xf32> to vector<32x32xbf16>
    %c3_159 = arith.constant 3 : index
    %c0_160 = arith.constant 0 : index
    %c0_161 = arith.constant 0 : index
    %263 = vector.load %arg4[%c3_159, %c0_160, %c0_161] : memref<4x32x32xbf16, #tpu.memory_space<vmem>>, vector<1x32x32xbf16>
    %264 = vector.shape_cast %263 : vector<1x32x32xbf16> to vector<32x32xbf16>
    %cst_162 = arith.constant dense<0.000000e+00> : vector<32x32xf32>
    %265 = tpu.matmul %262, %264, %cst_162 {dimension_numbers = #tpu.dot_dimension_numbers<[1], [0], [0], [1], [0, 0, 1, 1], [], []>} : vector<32x32xbf16>, vector<32x32xbf16>, vector<32x32xf32> -> vector<32x32xf32>
    %266 = arith.addf %222, %265 : vector<32x32xf32>
    %267 = arith.mulf %266, %266 : vector<32x32xf32>
    %cst_163 = arith.constant dense<0.000000e+00> : vector<32xf32>
    %268 = vector.multi_reduction <add>, %267, %cst_163 [1] : vector<32x32xf32> to vector<32xf32>
    %269 = vector.shape_cast %268 : vector<32xf32> to vector<32x1xf32>
    %cst_164 = arith.constant 3.200000e+01 : f32
    %270 = vector.broadcast %cst_164 : f32 to vector<32x1xf32>
    %271 = arith.divf %269, %270 : vector<32x1xf32>
    %cst_165 = arith.constant 9.99999997E-7 : f32
    %272 = vector.broadcast %cst_165 : f32 to vector<32x1xf32>
    %273 = arith.addf %271, %272 : vector<32x1xf32>
    %274 = math.rsqrt %273 : vector<32x1xf32>
    %275 = vector.broadcast %274 : vector<32x1xf32> to vector<32x32xf32>
    %276 = arith.mulf %266, %275 : vector<32x32xf32>
    %277 = arith.truncf %276 : vector<32x32xf32> to vector<32x32xbf16>
    %c3_166 = arith.constant 3 : index
    %c0_167 = arith.constant 0 : index
    %c0_168 = arith.constant 0 : index
    %c0_169 = arith.constant 0 : index
    %278 = vector.load %arg5[%c3_166, %c0_167, %c0_168, %c0_169] : memref<4x2x32x64xbf16, #tpu.memory_space<vmem>>, vector<1x1x32x64xbf16>
    %279 = vector.shape_cast %278 : vector<1x1x32x64xbf16> to vector<32x64xbf16>
    %cst_170 = arith.constant dense<0.000000e+00> : vector<32x64xf32>
    %280 = tpu.matmul %277, %279, %cst_170 {dimension_numbers = #tpu.dot_dimension_numbers<[1], [0], [0], [1], [0, 0, 1, 1], [], []>} : vector<32x32xbf16>, vector<32x64xbf16>, vector<32x64xf32> -> vector<32x64xf32>
    %c3_171 = arith.constant 3 : index
    %c1_172 = arith.constant 1 : index
    %c0_173 = arith.constant 0 : index
    %c0_174 = arith.constant 0 : index
    %281 = vector.load %arg5[%c3_171, %c1_172, %c0_173, %c0_174] : memref<4x2x32x64xbf16, #tpu.memory_space<vmem>>, vector<1x1x32x64xbf16>
    %282 = vector.shape_cast %281 : vector<1x1x32x64xbf16> to vector<32x64xbf16>
    %cst_175 = arith.constant dense<0.000000e+00> : vector<32x64xf32>
    %283 = tpu.matmul %277, %282, %cst_175 {dimension_numbers = #tpu.dot_dimension_numbers<[1], [0], [0], [1], [0, 0, 1, 1], [], []>} : vector<32x32xbf16>, vector<32x64xbf16>, vector<32x64xf32> -> vector<32x64xf32>
    %284 = arith.negf %280 : vector<32x64xf32>
    %285 = math.exp %284 : vector<32x64xf32>
    %cst_176 = arith.constant 1.000000e+00 : f32
    %286 = vector.broadcast %cst_176 : f32 to vector<32x64xf32>
    %287 = arith.addf %286, %285 : vector<32x64xf32>
    %288 = arith.divf %286, %287 : vector<32x64xf32>
    %289 = arith.mulf %280, %288 : vector<32x64xf32>
    %290 = arith.mulf %289, %283 : vector<32x64xf32>
    %291 = arith.truncf %290 : vector<32x64xf32> to vector<32x64xbf16>
    %c3_177 = arith.constant 3 : index
    %c0_178 = arith.constant 0 : index
    %c0_179 = arith.constant 0 : index
    %292 = vector.load %arg6[%c3_177, %c0_178, %c0_179] : memref<4x64x32xbf16, #tpu.memory_space<vmem>>, vector<1x64x32xbf16>
    %293 = vector.shape_cast %292 : vector<1x64x32xbf16> to vector<64x32xbf16>
    %cst_180 = arith.constant dense<0.000000e+00> : vector<32x32xf32>
    %294 = tpu.matmul %291, %293, %cst_180 {dimension_numbers = #tpu.dot_dimension_numbers<[1], [0], [0], [1], [0, 0, 1, 1], [], []>} : vector<32x64xbf16>, vector<64x32xbf16>, vector<32x32xf32> -> vector<32x32xf32>
    %295 = arith.addf %266, %294 : vector<32x32xf32>
    %296 = arith.truncf %295 : vector<32x32xf32> to vector<32x32xbf16>
    %c0_181 = arith.constant 0 : index
    %c0_182 = arith.constant 0 : index
    %297 = vector.load %arg7[%c0_181, %c0_182] : memref<32x32xbf16, #tpu.memory_space<vmem>>, vector<32x32xbf16>
    %cst_183 = arith.constant dense<0.000000e+00> : vector<32x32xf32>
    %298 = tpu.matmul %296, %297, %cst_183 {dimension_numbers = #tpu.dot_dimension_numbers<[1], [0], [0], [1], [0, 0, 1, 1], [], []>} : vector<32x32xbf16>, vector<32x32xbf16>, vector<32x32xf32> -> vector<32x32xf32>
    %c0_184 = arith.constant 0 : index
    %c0_185 = arith.constant 0 : index
    %299 = vector.load %arg8[%c0_184, %c0_185] : memref<1x32xf32, #tpu.memory_space<vmem>>, vector<1x32xf32>
    %300 = vector.broadcast %299 : vector<1x32xf32> to vector<32x32xf32>
    %301 = arith.addf %298, %300 : vector<32x32xf32>
    %c0_186 = arith.constant 0 : index
    %c0_187 = arith.constant 0 : index
    %302 = vector.load %arg9[%c0_186, %c0_187] : memref<32x32xf32, #tpu.memory_space<vmem>>, vector<32x32xf32>
    tpu.vector_store %arg9[%c0_186, %c0_187], %301 {strides = array<i32>} : memref<32x32xf32, #tpu.memory_space<vmem>>, vector<32x32xf32>,
    return
  }
}

</mosaic_0001>

<bundles_post_ra>
// kernel: magformer_forward.1
= control target key start
LH: loop header
LB: loop body
LE: loop exit
PB: predicated region body
PF: predicated region fallthrough
CT: control target
= control target key end

     0   :  { %14 = vsyncpa [#allocation3], 0  ;;  %s5168_s0 = inlined_call_operand.hbm [shape: f32[32,32], index: 0, kind: input, shape index: {}]   ;;  %s5169_s1 = inlined_call_operand.hbm [shape: f32[32,32], index: 1, kind: input, shape index: {}]   ;;  %s5170_s2 = inlined_call_operand.hbm [shape: f32[32,32], index: 2, kind: input, shape index: {}]   ;;  %s5171_s3 = inlined_call_operand.vmem [shape: bf16[4,3,32,32], index: 3, kind: input, shape index: {}]   ;;  %s5172_s4 = inlined_call_operand.hbm [shape: bf16[4,32,32], index: 4, kind: input, shape index: {}]   ;;  %s5173_s5 = inlined_call_operand.hbm [shape: bf16[4,2,32,64], index: 5, kind: input, shape index: {}]   ;;  %s5174_s6 = inlined_call_operand.vmem [shape: bf16[4,64,32], index: 6, kind: input, shape index: {}]   ;;  %s5175_s7 = inlined_call_operand.vmem [shape: bf16[32,32], index: 7, kind: input, shape index: {}]   ;;  %s5176_s8 = inlined_call_operand.vmem [shape: f32[1,32], index: 8, kind: input, shape index: {}]   ;;  %s5177_s9 = inlined_call_operand.hbm [shape: f32[32,32], index: 9, kind: output, shape index: {}]  }
   0x1   :  { %15 = vsyncpa [#allocation6], 0 }
   0x2   :  { %16 = vsyncpa [#allocation9], 0 }
   0x3   :  { %17 = vsyncpa [#allocation4], 0  ;;  %s4493_s30 = smov [#allocation5]   ;;  %s4494_s11 = smov [#allocation8]  }
   0x4   :  { %s35_s10 = sshll.u32 %s4493_s30, 4  ;;  %s61_s12 = sshll.u32 %s4494_s11, 4  ;;  %s36_s10 = int_to_ptr.vmem [resolvable:$true] %s35_s10  ;;  %s4553_s12 = int_to_ptr.vmem [resolvable:$true] %s61_s12 }
   0x5   :  { %s4353_s15 = scalar_lea.hbm %s5169_s1, 512 }
   0x6   :  { %p4354_p0 = scmp.ne.s32.totalorder %s5169_s1, %s4353_s15  ;;  %p4357_p1 = scmp.lt.u32.totalorder %s4353_s15, %s5169_s1 }
   0x8   :  { %p4359_p2 = pnand %p4357_p1, %p4354_p0 }
   0xa   :  { %4362 = shalt.err (!%p4359_p2)
}
   0xb   :  { %s4363_s20 = scalar_lea.vmem %s36_s10, 512  ;;  %p4368_p4 = scmp.lt.s32.totalorder %s36_s10, %s36_s10 }
   0xc   :  { %p4364_p3 = scmp.ne.s32.totalorder %s36_s10, %s4363_s20  ;;  %p4369_p5 = scmp.lt.s32.totalorder %s4363_s20, %s4363_s20 }
   0xe   :  { %p4370_p6 = por %p4369_p5, %p4368_p4 }
  0x10   :  { %p4371_p7 = pnand %p4370_p6, %p4364_p3 }
  0x12   :  { %4374 = shalt.err (!%p4371_p7)
}
  0x13   :  { %s4495_s21 = smov 128   ;;  %s4496_s22 = smov 8  }
  0x14   :  { %41 = dma.hbm_to_vmem [thread:$0]  %s5169_s1, 512, %s36_s10, [#allocation6], %s4495_s21, %s4495_s21, %s4496_s22  }
  0x15   :  { %s4375_s27 = scalar_lea.hbm %s5172_s4, 1024 }
  0x16   :  { %p4376_p8 = scmp.ne.s32.totalorder %s5172_s4, %s4375_s27  ;;  %p4379_p9 = scmp.lt.u32.totalorder %s4375_s27, %s5172_s4 }
  0x18   :  { %p4381_p10 = pnand %p4379_p9, %p4376_p8 }
  0x1a   :  { %4384 = shalt.err (!%p4381_p10)
}
  0x1b   :  { %s4385_s13 = scalar_lea.vmem %s4553_s12, 1024  ;;  %p4390_p12 = scmp.lt.s32.totalorder %s4553_s12, %s4553_s12 }
  0x1c   :  { %p4386_p11 = scmp.ne.s32.totalorder %s4553_s12, %s4385_s13  ;;  %p4391_p13 = scmp.lt.s32.totalorder %s4385_s13, %s4385_s13 }
  0x1e   :  { %p4392_p0 = por %p4391_p13, %p4390_p12 }
  0x20   :  { %p4393_p1 = pnand %p4392_p0, %p4386_p11 }
  0x22   :  { %4396 = shalt.err (!%p4393_p1)
}
  0x23   :  { %s4497_s1 = smov 64   ;;  %s4498_s10 = smov 4  }
  0x24   :  { %67 = dma.hbm_to_vmem [thread:$0]  %s5172_s4, 1024, %s4553_s12, [#allocation9], %s4497_s1, %s4497_s1, %s4498_s10  }
  0x25   :  { %s4499_s16 = smov [#allocation2]   ;;  %s4500_s18 = smov [#allocation7]  }
  0x26   :  { %s23_s17 = sshll.u32 %s4499_s16, 4  ;;  %s47_s19 = sshll.u32 %s4500_s18, 4  ;;  %s24_s17 = int_to_ptr.vmem [resolvable:$true] %s23_s17  ;;  %s4590_s19 = int_to_ptr.vmem [resolvable:$true] %s47_s19 }
  0x27   :  { %s4397_s24 = scalar_lea.hbm %s5168_s0, 512 }
  0x28   :  { %p4398_p2 = scmp.ne.s32.totalorder %s5168_s0, %s4397_s24  ;;  %p4401_p3 = scmp.lt.u32.totalorder %s4397_s24, %s5168_s0 }
  0x2a   :  { %p4403_p4 = pnand %p4401_p3, %p4398_p2 }
  0x2c   :  { %4406 = shalt.err (!%p4403_p4)
}
  0x2d   :  { %s4407_s4 = scalar_lea.vmem %s24_s17, 512  ;;  %p4412_p6 = scmp.lt.s32.totalorder %s24_s17, %s24_s17 }
  0x2e   :  { %p4408_p5 = scmp.ne.s32.totalorder %s24_s17, %s4407_s4  ;;  %p4413_p7 = scmp.lt.s32.totalorder %s4407_s4, %s4407_s4 }
  0x30   :  { %p4414_p8 = por %p4413_p7, %p4412_p6 }
  0x32   :  { %p4415_p9 = pnand %p4414_p8, %p4408_p5 }
  0x34   :  { %4418 = shalt.err (!%p4415_p9)
}
  0x35   :  { %29 = dma.hbm_to_vmem [thread:$0]  %s5168_s0, 512, %s24_s17, [#allocation3], %s4495_s21, %s4495_s21, %s4496_s22  }
  0x36   :  { %s4419_s13 = scalar_lea.hbm %s5170_s2, 512 }
  0x37   :  { %p4420_p10 = scmp.ne.s32.totalorder %s5170_s2, %s4419_s13  ;;  %p4423_p11 = scmp.lt.u32.totalorder %s4419_s13, %s5170_s2 }
  0x39   :  { %p4425_p12 = pnand %p4423_p11, %p4420_p10 }
  0x3b   :  { %4428 = shalt.err (!%p4425_p12)
}
  0x3c   :  { %s4429_s20 = scalar_lea.vmem %s4590_s19, 512  ;;  %p4434_p0 = scmp.lt.s32.totalorder %s4590_s19, %s4590_s19 }
  0x3d   :  { %p4430_p13 = scmp.ne.s32.totalorder %s4590_s19, %s4429_s20  ;;  %p4435_p1 = scmp.lt.s32.totalorder %s4429_s20, %s4429_s20 }
  0x3f   :  { %p4436_p2 = por %p4435_p1, %p4434_p0 }
  0x41   :  { %p4437_p3 = pnand %p4436_p2, %p4430_p13 }
  0x43   :  { %4440 = shalt.err (!%p4437_p3)
}
  0x44   :  { %53 = dma.hbm_to_vmem [thread:$0]  %s5170_s2, 512, %s4590_s19, [#allocation6], %s4495_s21, %s4495_s21, %s4496_s22  }
  0x45   :  { %s4501_s23 = smov [#allocation10]   ;;  %s4441_s27 = scalar_lea.hbm %s5173_s5, 2048 }
  0x46   :  { %s73_s24 = sshll.u32 %s4501_s23, 4  ;;  %p4442_p4 = scmp.ne.s32.totalorder %s5173_s5, %s4441_s27  ;;  %s74_s24 = int_to_ptr.vmem [resolvable:$true] %s73_s24 }
  0x47   :  { %p4445_p5 = scmp.lt.u32.totalorder %s4441_s27, %s5173_s5 }
  0x49   :  { %p4447_p6 = pnand %p4445_p5, %p4442_p4 }
  0x4b   :  { %4450 = shalt.err (!%p4447_p6)
}
  0x4c   :  { %s4451_s30 = scalar_lea.vmem %s74_s24, 2048  ;;  %p4456_p8 = scmp.lt.s32.totalorder %s74_s24, %s74_s24 }
  0x4d   :  { %p4452_p7 = scmp.ne.s32.totalorder %s74_s24, %s4451_s30  ;;  %p4457_p9 = scmp.lt.s32.totalorder %s4451_s30, %s4451_s30 }
  0x4f   :  { %p4458_p10 = por %p4457_p9, %p4456_p8 }
  0x51   :  { %p4459_p11 = pnand %p4458_p10, %p4452_p7 }
  0x53   :  { %4462 = shalt.err (!%p4459_p11)
}
  0x54   :  { %79 = dma.hbm_to_vmem [thread:$0]  %s5173_s5, 2048, %s74_s24, [#allocation9], %s4497_s1, %s4497_s1, %s4498_s10  }
  0x55   :  { %4485 = dma.done.wait [#allocation3], 512  }
  0x56   :  { %4486 = vsyncadd [#allocation3], 4294966784 }
  0x57   :  { %4487 = dma.done.wait [#allocation6], 1024  }
  0x58   :  { %4488 = vsyncadd [#allocation6], 4294966272 }
  0x59   :  { %4489 = dma.done.wait [#allocation9], 3072  }
  0x5a   :  { %4490 = vsyncadd [#allocation9], 4294964224  ;;  %v104_v0 = vld [vmem:[#allocation2 + $0x10] sm:$0xff]  ;;  %v102_v2 = vld [vmem:[#allocation2] sm:$0xff]  ;;  %vm122_vm0 = vcmask 261120   ;;  %vm847_vm1 = vcmask 523264  }
  0x5b   :  { %v108_v1 = vld [vmem:[#allocation5 + $0x10] sm:$0xff]  ;;  %v106_v4 = vld [vmem:[#allocation5] sm:$0xff]  ;;  %v105_v5 = vld [vmem:[#allocation2 + $0x18] sm:$0xff]  ;;  %s4502_s17 = smov [#allocation11]  }
  0x5c   :  { %v4642_v3 = vadd.f32 %v108_v1, %v104_v0  ;;  %v109_v6 = vld [vmem:[#allocation5 + $0x18] sm:$0xff]  ;;  %v4644_v7 = vadd.f32 %v106_v4, %v102_v2  ;;  %v103_v9 = vld [vmem:[#allocation2 + $0x8] sm:$0xff]  ;;  %v4091_v20 = vld [vmem:[%s5171_s3] sm:$0xff]   ;;  %s3366_s23 = sshll.u32 %s4502_s17, 4  ;;  %s3367_s23 = int_to_ptr.vmem [resolvable:$true] %s3366_s23 }
  0x5d   :  { %v4646_v8 = vadd.f32 %v109_v6, %v105_v5  ;;  %v107_v10 = vld [vmem:[#allocation5 + $0x8] sm:$0xff]  ;;  %v4092_v21 = vld [vmem:[%s5171_s3 + $0x10] sm:$0xff]   ;;  %v4094_v23 = vld [vmem:[%s5171_s3 + $0x18] sm:$0xff]   ;;  %3761 = vmatprep.subr.bf16.mxu0 %v4091_v20  ;;  %p4468_p13 = scmp.lt.s32.totalorder %s3367_s23, %s3367_s23 }
  0x5e   :  { %v120_v11 = vmul.f32 %v4642_v3, %v4642_v3  ;;  %v4650_v12 = vadd.f32 %v107_v10, %v103_v9  ;;  %v118_v13 = vmul.f32 %v4644_v7, %v4644_v7  ;;  %v4093_v22 = vld [vmem:[%s5171_s3 + $0x8] sm:$0xff]   ;;  %3769 = vmatprep.subr.bf16.mxu1 %v4092_v21  ;;  %3762 = vmatpush3.bf16.msra.mxu0 %v4091_v20  ;;  %v4095_v24 = vld [vmem:[%s5171_s3 + $0x20] sm:$0xff]   ;;  %v4703_v20 = vld [vmem:[#allocation7 + $0x18] sm:$0xff] }
  0x5f   :  { %v121_v14 = vmul.f32 %v4646_v8, %v4646_v8  ;;  %3770 = vmatpush3.bf16.msra.mxu1 %v4092_v21  ;;  %3763 = vmatprep.subr.bf16.mxu0 %v4093_v22  ;;  %v4096_v47 = vld [vmem:[%s5171_s3 + $0x28] sm:$0xff]   ;;  %v4696_v9 = vld [vmem:[#allocation7] sm:$0xff] }
  0x60   :  { %v129_v15 = vsel %vm122_vm0, %v120_v11, 0.0  ;;  %v119_v16 = vmul.f32 %v4650_v12, %v4650_v12  ;;  %v123_v17 = vsel %vm122_vm0, %v118_v13, 0.0  ;;  %3771 = vmatprep.subr.bf16.mxu1 %v4094_v23 }
  0x61   :  { %130 = vadd.xlane.f32.xlu1 %v129_v15  ;;  %124 = vadd.xlane.f32.xlu0 %v123_v17  ;;  %v132_v18 = vsel %vm122_vm0, %v121_v14, 0.0  ;;  %v4698_v15 = vld [vmem:[#allocation7 + $0x8] sm:$0xff] }
  0x62   :  { %v126_v19 = vsel %vm122_vm0, %v119_v16, 0.0  ;;  %3764 = vmatpush3.bf16.msra.mxu0 %v4093_v22  ;;  %v4700_v16 = vld [vmem:[#allocation7 + $0x10] sm:$0xff] }
  0x63   :  { %3772 = vmatpush3.bf16.msra.mxu1 %v4094_v23  ;;  %3777 = vmatprep.subr.bf16.mxu0 %v4095_v24 }
  0x65   :  { %133 = vadd.xlane.f32.xlu1 %v132_v18  ;;  %127 = vadd.xlane.f32.xlu0 %v126_v19 }
  0xee   :  { %v131_v25 = vpop.xlane.xlu1 %130  ;;  %v125_v27 = vpop.xlane.xlu0 %124 }
  0xef   :  { %v138_v26 = vmul.f32 0.03125, %v131_v25  ;;  %v136_v28 = vmul.f32 0.03125, %v125_v27 }
  0xf1   :  { %v142_v29 = vadd.f32 1e-06, %v138_v26  ;;  %v140_v30 = vadd.f32 1e-06, %v136_v28 }
  0xf2   :  { %v134_v31 = vpop.xlane.xlu1 %133  ;;  %v128_v33 = vpop.xlane.xlu0 %127 }
  0xf3   :  { %v139_v32 = vmul.f32 0.03125, %v134_v31  ;;  %v137_v34 = vmul.f32 0.03125, %v128_v33  ;;  %4157 = vrsqrt.f32 %v142_v29 }
  0xf4   :  { %4159 = vrsqrt.f32 %v140_v30 }
  0xf5   :  { %v143_v35 = vadd.f32 1e-06, %v139_v32  ;;  %v141_v36 = vadd.f32 1e-06, %v137_v34 }
  0xf7   :  { %4161 = vrsqrt.f32 %v143_v35 }
  0xf8   :  { %4163 = vrsqrt.f32 %v141_v36 }
  0xfd   :  { %v4158_v37 = vpop.eup %4157 }
  0xfe   :  { %v4160_v38 = vpop.eup %4159  ;;  %v150_v41 = vmul.f32 %v4158_v37, %v4642_v3 }
  0xff   :  { %v148_v43 = vmul.f32 %v4160_v38, %v4644_v7 }
 0x101   :  { %v4162_v39 = vpop.eup %4161 }
 0x102   :  { %v4164_v40 = vpop.eup %4163  ;;  %v151_v42 = vmul.f32 %v4162_v39, %v4646_v8 }
 0x103   :  { %v149_v44 = vmul.f32 %v4164_v40, %v4650_v12 }
 0x104   :  { %v153_v45 = vpack.c.bf16 %v151_v42, %v150_v41 }
 0x105   :  { %v152_v46 = vpack.c.bf16 %v149_v44, %v148_v43 }
 0x107   :  { %3765 = vmatprep.mubr.msk.bf16.mxu0 %vm122_vm0, %v152_v46  ;;  %3773 = vmatprep.mubr.msk.bf16.mxu1 %vm122_vm0, %v152_v46 }
 0x108   :  { %3766 = vmatmul.mubr.msk.bf16.vlgmr.msra.gmra.mrb[0].mxu0 %vm122_vm0, %v153_v45  ;;  %3774 = vmatmul.mubr.msk.bf16.vlgmr.msra.gmra.mrb[0].mxu1 %vm122_vm0, %v153_v45 }
 0x109   :  { %3778 = vmatpush3.bf16.msra.mxu0 %v4095_v24  ;;  %3781 = vmatprep.mubr.msk.bf16.mxu0 %vm122_vm0, %v152_v46 }
 0x10a   :  { %3779 = vmatprep.subr.bf16.mxu0 %v4096_v47 }
 0x10d   :  { %3780 = vmatpush3.bf16.msra.mxu0 %v4096_v47 }
 0x110   :  { %3782 = vmatmul.mubr.msk.bf16.vlgmr.msra.gmra.mrb[4].mxu0 %vm122_vm0, %v153_v45 }
 0x1db   :  { %v3767_v48 = vpop.f32.mrb[0].mxu0  ;;  %v3775_v49 = vpop.f32.mrb[0].mxu1 }
 0x1dc   :  { %v210_v50 = vpop.f32.mrb[1].mxu0  ;;  %v276_v51 = vpop.f32.mrb[1].mxu1 }
 0x1dd   :  { %v3768_v52 = vpop.f32.mrb[2].mxu0  ;;  %v3776_v53 = vpop.f32.mrb[2].mxu1 }
 0x1de   :  { %v358_v54 = vpack.c.bf16 %v3768_v52, %v3767_v48  ;;  %v360_v55 = vpack.c.bf16 %v3776_v53, %v3775_v49  ;;  %v213_v56 = vpop.f32.mrb[3].mxu0  ;;  %v279_v57 = vpop.f32.mrb[3].mxu1  ;;  %v4097_v48 = vld [vmem:[#allocation8] sm:$0xff]  }
 0x1df   :  { %v357_v58 = vpack.c.bf16 %v213_v56, %v210_v50  ;;  %v359_v59 = vpack.c.bf16 %v279_v57, %v276_v51 }
 0x1e0   :  { %v371_v4 = vsel %vm122_vm0, %v360_v55, 0 }
 0x1e1   :  { %v368_v60 = vsel %vm122_vm0, %v359_v59, 0  ;;  %4073 = vmatprep.subr.msk.bf16.mxu1 %vm122_vm0, %v359_v59  ;;  %3789 = vmatprep.mubr.msk.bf16.mxu1 %vm122_vm0, %v357_v58 }
 0x1e2   :  { %3786 = vmatpush3.bf16.xpose.msra.mxu1 %v368_v60 }
 0x1e3   :  { %v3783_v61 = vpop.f32.mrb[4].mxu0  ;;  %4074 = vmatprep.subr.msk.bf16.mxu1 %vm122_vm0, %v360_v55 }
 0x1e4   :  { %v342_v62 = vpop.f32.mrb[5].mxu0 }
 0x1e5   :  { %v3784_v63 = vpop.f32.mrb[6].mxu0 }
 0x1e6   :  { %v477_v0 = vpack.c.bf16 %v3784_v63, %v3783_v61  ;;  %v345_v1 = vpop.f32.mrb[7].mxu0  ;;  %v4098_v63 = vld [vmem:[#allocation8 + $0x8] sm:$0xff]  }
 0x1e7   :  { %v476_v2 = vpack.c.bf16 %v345_v1, %v342_v62 }
 0x1e9   :  { %3793 = vmatprep.subr.bf16.mxu0 %v476_v2 }
 0x1ea   :  { %3788 = vmatpush3.bf16.xpose.msra.mxu1 %v371_v4  ;;  %3794 = vmatpush3.bf16.msra.mxu0 %v476_v2 }
 0x1eb   :  { %3795 = vmatprep.subr.bf16.mxu0 %v477_v0 }
 0x1ee   :  { %3796 = vmatpush3.bf16.msra.mxu0 %v477_v0 }
 0x1ef   :  { %3801 = vmatprep.subr.bf16.mxu0 %v4097_v48 }
 0x1f1   :  { %3790 = vmatmul.mubr.msk.bf16.vlgmr.msra.gmra.mrb[4].mxu1 %vm122_vm0, %v358_v54 }
 0x2c4   :  { %v3791_v5 = vpop.f32.mrb[4].mxu1 }
 0x2c5   :  { %v407_v6 = vpop.f32.mrb[5].mxu1  ;;  %v424_v10 = vmul.f32 0.17677669, %v3791_v5 }
 0x2c6   :  { %v422_v11 = vmul.f32 0.17677669, %v407_v6  ;;  %v3792_v13 = vpop.f32.mrb[6].mxu1 }
 0x2c7   :  { %v410_v14 = vpop.f32.mrb[7].mxu1  ;;  %v425_v17 = vmul.f32 0.17677669, %v3792_v13  ;;  %v428_v23 = vadd.f32 %v424_v10, %v4700_v16 }
 0x2c8   :  { %v423_v18 = vmul.f32 0.17677669, %v410_v14  ;;  %v426_v19 = vadd.f32 %v422_v11, %v4696_v9 }
 0x2c9   :  { %v429_v25 = vadd.f32 %v425_v17, %v4703_v20  ;;  %v436_v26 = vsel %vm122_vm0, %v428_v23, -inf }
 0x2ca   :  { %v430_v21 = vsel %vm122_vm0, %v426_v19, -inf  ;;  %v427_v22 = vadd.f32 %v423_v18, %v4698_v15 }
 0x2cb   :  { %431 = vmax.xlane.f32.xlu0 %v430_v21  ;;  %v439_v27 = vsel %vm122_vm0, %v429_v25, -inf }
 0x2cc   :  { %v433_v24 = vsel %vm122_vm0, %v427_v22, -inf }
 0x2cd   :  { %434 = vmax.xlane.f32.xlu1 %v433_v24 }
 0x2cf   :  { %437 = vmax.xlane.f32.xlu0 %v436_v26  ;;  %v4099_v26 = vld [vmem:[#allocation10] sm:$0xff]  }
 0x2d0   :  { %3809 = vmatprep.subr.bf16.mxu1 %v4099_v26 }
 0x2d1   :  { %440 = vmax.xlane.f32.xlu1 %v439_v27  ;;  %v4100_v27 = vld [vmem:[#allocation10 + $0x10] sm:$0xff]   ;;  %3810 = vmatpush3.bf16.msra.mxu1 %v4099_v26 }
 0x358   :  { %v432_v28 = vpop.xlane.xlu0 %431 }
 0x359   :  { %v442_v29 = vsub.f32 %v426_v19, %v432_v28  ;;  %v4101_v28 = vld [vmem:[#allocation10 + $0x8] sm:$0xff]  }
 0x35a   :  { %v435_v30 = vpop.xlane.xlu1 %434  ;;  %3811 = vmatprep.subr.bf16.mxu1 %v4101_v28 }
 0x35b   :  { %v446_v31 = vmul.f32 1.442695, %v442_v29  ;;  %v443_v32 = vsub.f32 %v427_v22, %v435_v30  ;;  %v4102_v29 = vld [vmem:[#allocation10 + $0x18] sm:$0xff]   ;;  %3812 = vmatpush3.bf16.msra.mxu1 %v4101_v28 }
 0x35c   :  { %v438_v33 = vpop.xlane.xlu0 %437 }
 0x35d   :  { %4165 = vpow2.f32 %v446_v31  ;;  %v448_v34 = vmul.f32 1.442695, %v443_v32  ;;  %v444_v35 = vsub.f32 %v428_v23, %v438_v33 }
 0x35e   :  { %v441_v36 = vpop.xlane.xlu1 %440 }
 0x35f   :  { %4167 = vpow2.f32 %v448_v34  ;;  %v450_v37 = vmul.f32 1.442695, %v444_v35  ;;  %v445_v38 = vsub.f32 %v429_v25, %v441_v36 }
 0x361   :  { %4169 = vpow2.f32 %v450_v37  ;;  %v452_v39 = vmul.f32 1.442695, %v445_v38 }
 0x363   :  { %4171 = vpow2.f32 %v452_v39 }
 0x367   :  { %v4166_v40 = vpop.eup %4165 }
 0x368   :  { %v454_v41 = vsel %vm122_vm0, %v4166_v40, 0.0 }
 0x369   :  { %v4168_v42 = vpop.eup %4167  ;;  %455 = vadd.xlane.f32.xlu0 %v454_v41 }
 0x36a   :  { %v457_v43 = vsel %vm122_vm0, %v4168_v42, 0.0 }
 0x36b   :  { %v4170_v44 = vpop.eup %4169  ;;  %458 = vadd.xlane.f32.xlu1 %v457_v43 }
 0x36c   :  { %v460_v45 = vsel %vm122_vm0, %v4170_v44, 0.0 }
 0x36d   :  { %v4172_v46 = vpop.eup %4171  ;;  %461 = vadd.xlane.f32.xlu0 %v460_v45 }
 0x36e   :  { %v463_v47 = vsel %vm122_vm0, %v4172_v46, 0.0 }
 0x36f   :  { %464 = vadd.xlane.f32.xlu1 %v463_v47 }
 0x3f6   :  { %v456_v49 = vpop.xlane.xlu0 %455 }
 0x3f7   :  { %4173 = vrcp.f32 %v456_v49 }
 0x3f8   :  { %v459_v50 = vpop.xlane.xlu1 %458 }
 0x3f9   :  { %4175 = vrcp.f32 %v459_v50 }
 0x3fa   :  { %v462_v51 = vpop.xlane.xlu0 %461 }
 0x3fb   :  { %4177 = vrcp.f32 %v462_v51 }
 0x3fc   :  { %v465_v52 = vpop.xlane.xlu1 %464 }
 0x3fd   :  { %4179 = vrcp.f32 %v465_v52  ;;  %v4103_v52 = vld [vmem:[%s5174_s6] sm:$0xff]  }
 0x3fe   :  { %3825 = vmatprep.subr.bf16.mxu1 %v4103_v52 }
 0x401   :  { %v4174_v53 = vpop.eup %4173 }
 0x402   :  { %v470_v55 = vmul.f32 %v4174_v53, %v4166_v40  ;;  %v4104_v53 = vld [vmem:[%s5174_s6 + $0x8] sm:$0xff]  }
 0x403   :  { %v4176_v54 = vpop.eup %4175 }
 0x404   :  { %v471_v56 = vmul.f32 %v4176_v54, %v4168_v42  ;;  %v4105_v54 = vld [vmem:[%s5174_s6 + $0x10] sm:$0xff]  }
 0x405   :  { %v4178_v57 = vpop.eup %4177 }
 0x406   :  { %v474_v58 = vpack.c.bf16 %v471_v56, %v470_v55  ;;  %v472_v60 = vmul.f32 %v4178_v57, %v4170_v44  ;;  %v4106_v55 = vld [vmem:[%s5174_s6 + $0x18] sm:$0xff]  }
 0x407   :  { %v4180_v59 = vpop.eup %4179 }
 0x408   :  { %v473_v61 = vmul.f32 %v4180_v59, %v4172_v46  ;;  %3797 = vmatprep.mubr.msk.bf16.mxu0 %vm122_vm0, %v474_v58 }
 0x40a   :  { %v475_v62 = vpack.c.bf16 %v473_v61, %v472_v60 }
 0x40c   :  { %3798 = vmatmul.mubr.msk.bf16.vlgmr.msra.gmra.mrb[8].mxu0 %vm122_vm0, %v475_v62 }
 0x40d   :  { %3802 = vmatpush3.bf16.msra.mxu0 %v4097_v48 }
 0x40e   :  { %3803 = vmatprep.subr.bf16.mxu0 %v4098_v63 }
 0x411   :  { %3804 = vmatpush3.bf16.msra.mxu0 %v4098_v63 }
 0x412   :  { %3817 = vmatprep.subr.bf16.mxu0 %v4100_v27 }
 0x4df   :  { %v3799_v0 = vpop.f32.mrb[8].mxu0 }
 0x4e0   :  { %v518_v1 = vpop.f32.mrb[9].mxu0 }
 0x4e1   :  { %v3800_v2 = vpop.f32.mrb[10].mxu0 }
 0x4e2   :  { %v534_v4 = vpack.c.bf16 %v3800_v2, %v3799_v0  ;;  %v521_v5 = vpop.f32.mrb[11].mxu0 }
 0x4e3   :  { %v533_v6 = vpack.c.bf16 %v521_v5, %v518_v1 }
 0x4e5   :  { %3805 = vmatprep.mubr.msk.bf16.mxu0 %vm122_vm0, %v533_v6 }
 0x4e6   :  { %3806 = vmatmul.mubr.msk.bf16.vlgmr.msra.gmra.mrb[12].mxu0 %vm122_vm0, %v534_v4 }
 0x4e7   :  { %3818 = vmatpush3.bf16.msra.mxu0 %v4100_v27 }
 0x4e8   :  { %3819 = vmatprep.subr.bf16.mxu0 %v4102_v29 }
 0x4eb   :  { %3820 = vmatpush3.bf16.msra.mxu0 %v4102_v29 }
 0x5b9   :  { %v3807_v10 = vpop.f32.mrb[12].mxu0 }
 0x5ba   :  { %v591_v11 = vpop.f32.mrb[13].mxu0  ;;  %v4721_v13 = vadd.f32 %v3807_v10, %v4642_v3 }
 0x5bb   :  { %v4724_v14 = vadd.f32 %v591_v11, %v4644_v7  ;;  %v3808_v17 = vpop.f32.mrb[14].mxu0 }
 0x5bc   :  { %v594_v18 = vpop.f32.mrb[15].mxu0  ;;  %v4727_v19 = vadd.f32 %v3808_v17, %v4646_v8  ;;  %v612_v7 = vmul.f32 %v4721_v13, %v4721_v13 }
 0x5bd   :  { %v4730_v21 = vadd.f32 %v594_v18, %v4650_v12  ;;  %v610_v22 = vmul.f32 %v4724_v14, %v4724_v14 }
 0x5be   :  { %v613_v8 = vmul.f32 %v4727_v19, %v4727_v19  ;;  %v620_v12 = vsel %vm122_vm0, %v612_v7, 0.0 }
 0x5bf   :  { %v614_v23 = vsel %vm122_vm0, %v610_v22, 0.0  ;;  %v611_v3 = vmul.f32 %v4730_v21, %v4730_v21 }
 0x5c0   :  { %615 = vadd.xlane.f32.xlu0 %v614_v23  ;;  %v623_v25 = vsel %vm122_vm0, %v613_v8, 0.0 }
 0x5c1   :  { %v617_v24 = vsel %vm122_vm0, %v611_v3, 0.0 }
 0x5c2   :  { %618 = vadd.xlane.f32.xlu1 %v617_v24 }
 0x5c4   :  { %621 = vadd.xlane.f32.xlu0 %v620_v12 }
 0x5c6   :  { %624 = vadd.xlane.f32.xlu1 %v623_v25 }
 0x64d   :  { %v616_v30 = vpop.xlane.xlu0 %615 }
 0x64e   :  { %v626_v31 = vmul.f32 0.03125, %v616_v30 }
 0x64f   :  { %v619_v32 = vpop.xlane.xlu1 %618 }
 0x650   :  { %v630_v33 = vadd.f32 1e-06, %v626_v31  ;;  %v627_v34 = vmul.f32 0.03125, %v619_v32 }
 0x651   :  { %v622_v35 = vpop.xlane.xlu0 %621 }
 0x652   :  { %4181 = vrsqrt.f32 %v630_v33  ;;  %v631_v36 = vadd.f32 1e-06, %v627_v34  ;;  %v628_v37 = vmul.f32 0.03125, %v622_v35 }
 0x653   :  { %v625_v38 = vpop.xlane.xlu1 %624 }
 0x654   :  { %4183 = vrsqrt.f32 %v631_v36  ;;  %v632_v39 = vadd.f32 1e-06, %v628_v37  ;;  %v629_v40 = vmul.f32 0.03125, %v625_v38 }
 0x656   :  { %4185 = vrsqrt.f32 %v632_v39  ;;  %v633_v41 = vadd.f32 1e-06, %v629_v40 }
 0x658   :  { %4187 = vrsqrt.f32 %v633_v41 }
 0x65c   :  { %v4182_v42 = vpop.eup %4181 }
 0x65d   :  { %v638_v44 = vmul.f32 %v4182_v42, %v4724_v14 }
 0x65e   :  { %v4184_v43 = vpop.eup %4183 }
 0x65f   :  { %v639_v45 = vmul.f32 %v4184_v43, %v4730_v21 }
 0x660   :  { %v4186_v46 = vpop.eup %4185 }
 0x661   :  { %v642_v47 = vpack.c.bf16 %v639_v45, %v638_v44  ;;  %v640_v49 = vmul.f32 %v4186_v46, %v4721_v13  ;;  %v4107_v46 = vld [vmem:[%s5171_s3 + $0x30] sm:$0xff]  }
 0x662   :  { %v4188_v48 = vpop.eup %4187  ;;  %3837 = vmatprep.subr.bf16.mxu0 %v4107_v46 }
 0x663   :  { %v641_v50 = vmul.f32 %v4188_v48, %v4727_v19  ;;  %3813 = vmatprep.mubr.msk.bf16.mxu1 %vm122_vm0, %v642_v47  ;;  %3821 = vmatprep.mubr.msk.bf16.mxu0 %vm122_vm0, %v642_v47  ;;  %v4108_v47 = vld [vmem:[%s5171_s3 + $0x50] sm:$0xff]   ;;  %v4109_v48 = vld [vmem:[%s5171_s3 + $0x38] sm:$0xff]  }
 0x665   :  { %v643_v51 = vpack.c.bf16 %v641_v50, %v640_v49  ;;  %v4110_v49 = vld [vmem:[%s5171_s3 + $0x58] sm:$0xff]   ;;  %v4111_v50 = vld [vmem:[%s5171_s3 + $0x40] sm:$0xff]  }
 0x667   :  { %3814 = vmatmul.mubr.msk.bf16.vlgmr.msra.gmra.mrb[8].mxu1 %vm122_vm0, %v643_v51  ;;  %3822 = vmatmul.mubr.msk.bf16.vlgmr.msra.gmra.mrb[16].mxu0 %vm122_vm0, %v643_v51 }
 0x668   :  { %3826 = vmatpush3.bf16.msra.mxu1 %v4103_v52  ;;  %3838 = vmatpush3.bf16.msra.mxu0 %v4107_v46 }
 0x669   :  { %3827 = vmatprep.subr.bf16.mxu1 %v4104_v53  ;;  %3839 = vmatprep.subr.bf16.mxu0 %v4109_v48 }
 0x66c   :  { %3828 = vmatpush3.bf16.msra.mxu1 %v4104_v53  ;;  %3840 = vmatpush3.bf16.msra.mxu0 %v4109_v48 }
 0x66d   :  { %3829 = vmatprep.subr.bf16.mxu1 %v4105_v54  ;;  %3845 = vmatprep.subr.bf16.mxu0 %v4111_v50 }
 0x670   :  { %3830 = vmatpush3.bf16.msra.mxu1 %v4105_v54 }
 0x671   :  { %3831 = vmatprep.subr.bf16.mxu1 %v4106_v55 }
 0x674   :  { %3832 = vmatpush3.bf16.msra.mxu1 %v4106_v55 }
 0x675   :  { %3853 = vmatprep.subr.bf16.mxu1 %v4108_v47 }
 0x73a   :  { %v3815_v56 = vpop.f32.mrb[8].mxu1  ;;  %v3823_v57 = vpop.f32.mrb[16].mxu0 }
 0x73b   :  { %v3418_v58 = vmul.f32 -1.442695, %v3815_v56  ;;  %v700_v59 = vpop.f32.mrb[9].mxu1  ;;  %v766_v60 = vpop.f32.mrb[17].mxu0 }
 0x73c   :  { %v3416_v61 = vmul.f32 -1.442695, %v700_v59  ;;  %v3816_v62 = vpop.f32.mrb[10].mxu1  ;;  %v3824_v63 = vpop.f32.mrb[18].mxu0 }
 0x73d   :  { %4189 = vpow2.f32 %v3418_v58  ;;  %v3419_v0 = vmul.f32 -1.442695, %v3816_v62  ;;  %v703_v1 = vpop.f32.mrb[11].mxu1  ;;  %v769_v2 = vpop.f32.mrb[19].mxu0 }
 0x73e   :  { %4191 = vpow2.f32 %v3416_v61  ;;  %v3417_v4 = vmul.f32 -1.442695, %v703_v1 }
 0x73f   :  { %4193 = vpow2.f32 %v3419_v0 }
 0x740   :  { %4195 = vpow2.f32 %v3417_v4 }
 0x747   :  { %v4190_v5 = vpop.eup %4189 }
 0x748   :  { %v4192_v6 = vpop.eup %4191  ;;  %v795_v10 = vadd.f32 1.0, %v4190_v5 }
 0x749   :  { %v4194_v11 = vpop.eup %4193  ;;  %v793_v17 = vadd.f32 1.0, %v4192_v6 }
 0x74a   :  { %v4196_v18 = vpop.eup %4195  ;;  %4197 = vrcp.f32 %v795_v10  ;;  %v796_v22 = vadd.f32 1.0, %v4194_v11 }
 0x74b   :  { %4199 = vrcp.f32 %v793_v17  ;;  %v794_v23 = vadd.f32 1.0, %v4196_v18  ;;  %v4112_v18 = vld [vmem:[%s5171_s3 + $0x48] sm:$0xff]  }
 0x74c   :  { %4201 = vrcp.f32 %v796_v22 }
 0x74d   :  { %4203 = vrcp.f32 %v794_v23 }
 0x754   :  { %v4198_v3 = vpop.eup %4197 }
 0x755   :  { %v4200_v7 = vpop.eup %4199  ;;  %v807_v24 = vmul.f32 %v4198_v3, %v3815_v56 }
 0x756   :  { %v4202_v8 = vpop.eup %4201  ;;  %v805_v12 = vmul.f32 %v4200_v7, %v700_v59 }
 0x757   :  { %v4204_v25 = vpop.eup %4203  ;;  %v811_v26 = vmul.f32 %v3823_v57, %v807_v24  ;;  %v808_v27 = vmul.f32 %v4202_v8, %v3816_v62 }
 0x758   :  { %v809_v28 = vmul.f32 %v805_v12, %v766_v60  ;;  %v806_v29 = vmul.f32 %v4204_v25, %v703_v1 }
 0x759   :  { %v812_v30 = vmul.f32 %v3824_v63, %v808_v27 }
 0x75a   :  { %v810_v31 = vmul.f32 %v806_v29, %v769_v2 }
 0x75b   :  { %v814_v32 = vpack.c.bf16 %v812_v30, %v811_v26 }
 0x75c   :  { %v813_v33 = vpack.c.bf16 %v810_v31, %v809_v28 }
 0x75e   :  { %3833 = vmatprep.mubr.msk.bf16.mxu1 %vm847_vm1, %v813_v33 }
 0x75f   :  { %3834 = vmatmul.mubr.msk.bf16.vlgmr.msra.gmra.mrb[12].mxu1 %vm847_vm1, %v814_v32 }
 0x760   :  { %3854 = vmatpush3.bf16.msra.mxu1 %v4108_v47 }
 0x761   :  { %3855 = vmatprep.subr.bf16.mxu1 %v4110_v49 }
 0x764   :  { %3856 = vmatpush3.bf16.msra.mxu1 %v4110_v49 }
 0x832   :  { %v3835_v34 = vpop.f32.mrb[12].mxu1 }
 0x833   :  { %v888_v35 = vpop.f32.mrb[13].mxu1  ;;  %v4767_v36 = vadd.f32 %v3835_v34, %v4721_v13 }
 0x834   :  { %v4770_v37 = vadd.f32 %v888_v35, %v4724_v14  ;;  %v3836_v38 = vpop.f32.mrb[14].mxu1 }
 0x835   :  { %v891_v39 = vpop.f32.mrb[15].mxu1  ;;  %v4773_v40 = vadd.f32 %v3836_v38, %v4727_v19  ;;  %v909_v14 = vmul.f32 %v4767_v36, %v4767_v36 }
 0x836   :  { %v4776_v41 = vadd.f32 %v891_v39, %v4730_v21  ;;  %v907_v42 = vmul.f32 %v4770_v37, %v4770_v37 }
 0x837   :  { %v910_v19 = vmul.f32 %v4773_v40, %v4773_v40  ;;  %v917_v21 = vsel %vm122_vm0, %v909_v14, 0.0 }
 0x838   :  { %v911_v43 = vsel %vm122_vm0, %v907_v42, 0.0  ;;  %v908_v13 = vmul.f32 %v4776_v41, %v4776_v41 }
 0x839   :  { %912 = vadd.xlane.f32.xlu0 %v911_v43  ;;  %v920_v45 = vsel %vm122_vm0, %v910_v19, 0.0 }
 0x83a   :  { %v914_v44 = vsel %vm122_vm0, %v908_v13, 0.0 }
 0x83b   :  { %915 = vadd.xlane.f32.xlu1 %v914_v44 }
 0x83d   :  { %918 = vadd.xlane.f32.xlu0 %v917_v21 }
 0x83f   :  { %921 = vadd.xlane.f32.xlu1 %v920_v45 }
 0x8c6   :  { %v913_v51 = vpop.xlane.xlu0 %912 }
 0x8c7   :  { %v923_v52 = vmul.f32 0.03125, %v913_v51 }
 0x8c8   :  { %v916_v53 = vpop.xlane.xlu1 %915 }
 0x8c9   :  { %v927_v54 = vadd.f32 1e-06, %v923_v52  ;;  %v924_v55 = vmul.f32 0.03125, %v916_v53 }
 0x8ca   :  { %v919_v56 = vpop.xlane.xlu0 %918 }
 0x8cb   :  { %4205 = vrsqrt.f32 %v927_v54  ;;  %v928_v57 = vadd.f32 1e-06, %v924_v55  ;;  %v925_v58 = vmul.f32 0.03125, %v919_v56 }
 0x8cc   :  { %v922_v59 = vpop.xlane.xlu1 %921 }
 0x8cd   :  { %4207 = vrsqrt.f32 %v928_v57  ;;  %v929_v60 = vadd.f32 1e-06, %v925_v58  ;;  %v926_v61 = vmul.f32 0.03125, %v922_v59 }
 0x8cf   :  { %4209 = vrsqrt.f32 %v929_v60  ;;  %v930_v62 = vadd.f32 1e-06, %v926_v61 }
 0x8d1   :  { %4211 = vrsqrt.f32 %v930_v62 }
 0x8d5   :  { %v4206_v63 = vpop.eup %4205 }
 0x8d6   :  { %v935_v1 = vmul.f32 %v4206_v63, %v4770_v37 }
 0x8d7   :  { %v4208_v0 = vpop.eup %4207 }
 0x8d8   :  { %v936_v2 = vmul.f32 %v4208_v0, %v4776_v41 }
 0x8d9   :  { %v4210_v4 = vpop.eup %4209 }
 0x8da   :  { %v939_v5 = vpack.c.bf16 %v936_v2, %v935_v1  ;;  %v937_v10 = vmul.f32 %v4210_v4, %v4767_v36 }
 0x8db   :  { %v4212_v6 = vpop.eup %4211 }
 0x8dc   :  { %v938_v11 = vmul.f32 %v4212_v6, %v4773_v40  ;;  %3841 = vmatprep.mubr.msk.bf16.mxu0 %vm122_vm0, %v939_v5  ;;  %3857 = vmatprep.mubr.msk.bf16.mxu1 %vm122_vm0, %v939_v5 }
 0x8de   :  { %v940_v17 = vpack.c.bf16 %v938_v11, %v937_v10  ;;  %v4113_v10 = vld [vmem:[#allocation8 + $0x10] sm:$0xff]  }
 0x8e0   :  { %3842 = vmatmul.mubr.msk.bf16.vlgmr.msra.gmra.mrb[20].mxu0 %vm122_vm0, %v940_v17  ;;  %3858 = vmatmul.mubr.msk.bf16.vlgmr.msra.gmra.mrb[16].mxu1 %vm122_vm0, %v940_v17 }
 0x8e1   :  { %3846 = vmatpush3.bf16.msra.mxu0 %v4111_v50  ;;  %3849 = vmatprep.mubr.msk.bf16.mxu0 %vm122_vm0, %v939_v5 }
 0x8e2   :  { %3847 = vmatprep.subr.bf16.mxu0 %v4112_v18 }
 0x8e5   :  { %3848 = vmatpush3.bf16.msra.mxu0 %v4112_v18 }
 0x8e8   :  { %3850 = vmatmul.mubr.msk.bf16.vlgmr.msra.gmra.mrb[24].mxu0 %vm122_vm0, %v940_v17 }
 0x9b3   :  { %v3843_v22 = vpop.f32.mrb[20].mxu0  ;;  %v3859_v23 = vpop.f32.mrb[16].mxu1 }
 0x9b4   :  { %v998_v3 = vpop.f32.mrb[21].mxu0  ;;  %v1130_v7 = vpop.f32.mrb[17].mxu1 }
 0x9b5   :  { %v3844_v24 = vpop.f32.mrb[22].mxu0  ;;  %v3860_v8 = vpop.f32.mrb[18].mxu1 }
 0x9b6   :  { %v1146_v12 = vpack.c.bf16 %v3844_v24, %v3843_v22  ;;  %v1265_v25 = vpack.c.bf16 %v3860_v8, %v3859_v23  ;;  %v1001_v26 = vpop.f32.mrb[23].mxu0  ;;  %v1133_v27 = vpop.f32.mrb[19].mxu1 }
 0x9b7   :  { %v1145_v28 = vpack.c.bf16 %v1001_v26, %v998_v3  ;;  %v1264_v29 = vpack.c.bf16 %v1133_v27, %v1130_v7 }
 0x9b9   :  { %3865 = vmatprep.mubr.msk.bf16.mxu0 %vm122_vm0, %v1145_v28  ;;  %3869 = vmatprep.subr.bf16.mxu1 %v1264_v29 }
 0x9ba   :  { %3870 = vmatpush3.bf16.msra.mxu1 %v1264_v29  ;;  %v4114_v29 = vld [vmem:[#allocation8 + $0x18] sm:$0xff]  }
 0x9bb   :  { %v3851_v30 = vpop.f32.mrb[24].mxu0  ;;  %3871 = vmatprep.subr.bf16.mxu1 %v1265_v25 }
 0x9bc   :  { %v1064_v31 = vpop.f32.mrb[25].mxu0 }
 0x9bd   :  { %v3852_v32 = vpop.f32.mrb[26].mxu0 }
 0x9be   :  { %v1148_v33 = vpack.c.bf16 %v3852_v32, %v3851_v30  ;;  %v1067_v34 = vpop.f32.mrb[27].mxu0  ;;  %3872 = vmatpush3.bf16.msra.mxu1 %v1265_v25 }
 0x9bf   :  { %v1147_v35 = vpack.c.bf16 %v1067_v34, %v1064_v31  ;;  %3877 = vmatprep.subr.bf16.mxu1 %v4113_v10 }
 0x9c0   :  { %v1159_v39 = vsel %vm122_vm0, %v1148_v33, 0 }
 0x9c1   :  { %v1156_v38 = vsel %vm122_vm0, %v1147_v35, 0  ;;  %4075 = vmatprep.subr.msk.bf16.mxu0 %vm122_vm0, %v1147_v35 }
 0x9c2   :  { %3862 = vmatpush3.bf16.xpose.msra.mxu0 %v1156_v38 }
 0x9c3   :  { %4076 = vmatprep.subr.msk.bf16.mxu0 %vm122_vm0, %v1148_v33 }
 0x9ca   :  { %3864 = vmatpush3.bf16.xpose.msra.mxu0 %v1159_v39 }
 0x9d1   :  { %3866 = vmatmul.mubr.msk.bf16.vlgmr.msra.gmra.mrb[28].mxu0 %vm122_vm0, %v1146_v12 }
 0xaa4   :  { %v3867_v42 = vpop.f32.mrb[28].mxu0 }
 0xaa5   :  { %v1195_v43 = vpop.f32.mrb[29].mxu0  ;;  %v1212_v13 = vmul.f32 0.17677669, %v3867_v42 }
 0xaa6   :  { %v1210_v14 = vmul.f32 0.17677669, %v1195_v43  ;;  %v3868_v44 = vpop.f32.mrb[30].mxu0 }
 0xaa7   :  { %v1198_v19 = vpop.f32.mrb[31].mxu0  ;;  %v1213_v21 = vmul.f32 0.17677669, %v3868_v44  ;;  %v1216_v49 = vadd.f32 %v1212_v13, %v4700_v16 }
 0xaa8   :  { %v1211_v45 = vmul.f32 0.17677669, %v1198_v19  ;;  %v1214_v46 = vadd.f32 %v1210_v14, %v4696_v9 }
 0xaa9   :  { %v1217_v51 = vadd.f32 %v1213_v21, %v4703_v20  ;;  %v1224_v52 = vsel %vm122_vm0, %v1216_v49, -inf }
 0xaaa   :  { %v1218_v47 = vsel %vm122_vm0, %v1214_v46, -inf  ;;  %v1215_v48 = vadd.f32 %v1211_v45, %v4698_v15 }
 0xaab   :  { %1219 = vmax.xlane.f32.xlu0 %v1218_v47  ;;  %v1227_v53 = vsel %vm122_vm0, %v1217_v51, -inf }
 0xaac   :  { %v1221_v50 = vsel %vm122_vm0, %v1215_v48, -inf }
 0xaad   :  { %1222 = vmax.xlane.f32.xlu1 %v1221_v50  ;;  %v4117_v50 = vld [vmem:[#allocation10 + $0x28] sm:$0xff]  }
 0xaaf   :  { %1225 = vmax.xlane.f32.xlu0 %v1224_v52 }
 0xab1   :  { %1228 = vmax.xlane.f32.xlu1 %v1227_v53 }
 0xb38   :  { %v1220_v54 = vpop.xlane.xlu0 %1219 }
 0xb39   :  { %v1230_v9 = vsub.f32 %v1214_v46, %v1220_v54 }
 0xb3a   :  { %v1223_v55 = vpop.xlane.xlu1 %1222 }
 0xb3b   :  { %v1234_v56 = vmul.f32 1.442695, %v1230_v9  ;;  %v1231_v57 = vsub.f32 %v1215_v48, %v1223_v55  ;;  %v4115_v48 = vld [vmem:[#allocation10 + $0x20] sm:$0xff]  }
 0xb3c   :  { %v1226_v15 = vpop.xlane.xlu0 %1225  ;;  %3885 = vmatprep.subr.bf16.mxu0 %v4115_v48 }
 0xb3d   :  { %4213 = vpow2.f32 %v1234_v56  ;;  %v1236_v16 = vmul.f32 1.442695, %v1231_v57  ;;  %v1232_v58 = vsub.f32 %v1216_v49, %v1226_v15  ;;  %v4116_v49 = vld [vmem:[#allocation10 + $0x30] sm:$0xff]   ;;  %3886 = vmatpush3.bf16.msra.mxu0 %v4115_v48 }
 0xb3e   :  { %v1229_v59 = vpop.xlane.xlu1 %1228  ;;  %3887 = vmatprep.subr.bf16.mxu0 %v4117_v50 }
 0xb3f   :  { %4215 = vpow2.f32 %v1236_v16  ;;  %v1238_v60 = vmul.f32 1.442695, %v1232_v58  ;;  %v1233_v20 = vsub.f32 %v1217_v51, %v1229_v59  ;;  %v4118_v51 = vld [vmem:[#allocation10 + $0x38] sm:$0xff]  }
 0xb41   :  { %4217 = vpow2.f32 %v1238_v60  ;;  %v1240_v61 = vmul.f32 1.442695, %v1233_v20  ;;  %3888 = vmatpush3.bf16.msra.mxu0 %v4117_v50 }
 0xb43   :  { %4219 = vpow2.f32 %v1240_v61 }
 0xb47   :  { %v4214_v62 = vpop.eup %4213 }
 0xb48   :  { %v1242_v63 = vsel %vm122_vm0, %v4214_v62, 0.0 }
 0xb49   :  { %v4216_v0 = vpop.eup %4215  ;;  %1243 = vadd.xlane.f32.xlu0 %v1242_v63 }
 0xb4a   :  { %v1245_v1 = vsel %vm122_vm0, %v4216_v0, 0.0 }
 0xb4b   :  { %v4218_v2 = vpop.eup %4217  ;;  %1246 = vadd.xlane.f32.xlu1 %v1245_v1 }
 0xb4c   :  { %v1248_v4 = vsel %vm122_vm0, %v4218_v2, 0.0 }
 0xb4d   :  { %v4220_v5 = vpop.eup %4219  ;;  %1249 = vadd.xlane.f32.xlu0 %v1248_v4 }
 0xb4e   :  { %v1251_v6 = vsel %vm122_vm0, %v4220_v5, 0.0 }
 0xb4f   :  { %1252 = vadd.xlane.f32.xlu1 %v1251_v6 }
 0xbd6   :  { %v1244_v11 = vpop.xlane.xlu0 %1243 }
 0xbd7   :  { %4221 = vrcp.f32 %v1244_v11  ;;  %v4120_v11 = vld [vmem:[%s5174_s6 + $0x28] sm:$0xff]  }
 0xbd8   :  { %v1247_v17 = vpop.xlane.xlu1 %1246 }
 0xbd9   :  { %4223 = vrcp.f32 %v1247_v17  ;;  %v4121_v17 = vld [vmem:[%s5174_s6 + $0x30] sm:$0xff]  }
 0xbda   :  { %v1250_v18 = vpop.xlane.xlu0 %1249 }
 0xbdb   :  { %4225 = vrcp.f32 %v1250_v18  ;;  %v4122_v18 = vld [vmem:[%s5174_s6 + $0x38] sm:$0xff]  }
 0xbdc   :  { %v1253_v22 = vpop.xlane.xlu1 %1252 }
 0xbdd   :  { %4227 = vrcp.f32 %v1253_v22 }
 0xbe1   :  { %v4222_v23 = vpop.eup %4221 }
 0xbe2   :  { %v1258_v7 = vmul.f32 %v4222_v23, %v4214_v62 }
 0xbe3   :  { %v4224_v3 = vpop.eup %4223 }
 0xbe4   :  { %v1259_v24 = vmul.f32 %v4224_v3, %v4216_v0 }
 0xbe5   :  { %v4226_v8 = vpop.eup %4225 }
 0xbe6   :  { %v1262_v12 = vpack.c.bf16 %v1259_v24, %v1258_v7  ;;  %v1260_v26 = vmul.f32 %v4226_v8, %v4218_v2 }
 0xbe7   :  { %v4228_v25 = vpop.eup %4227 }
 0xbe8   :  { %v1261_v27 = vmul.f32 %v4228_v25, %v4220_v5  ;;  %3873 = vmatprep.mubr.msk.bf16.mxu1 %vm122_vm0, %v1262_v12 }
 0xbea   :  { %v1263_v28 = vpack.c.bf16 %v1261_v27, %v1260_v26 }
 0xbec   :  { %3874 = vmatmul.mubr.msk.bf16.vlgmr.msra.gmra.mrb[20].mxu1 %vm122_vm0, %v1263_v28 }
 0xbed   :  { %3878 = vmatpush3.bf16.msra.mxu1 %v4113_v10  ;;  %v4119_v10 = vld [vmem:[%s5174_s6 + $0x20] sm:$0xff]  }
 0xbee   :  { %3879 = vmatprep.subr.bf16.mxu1 %v4114_v29  ;;  %3901 = vmatprep.subr.bf16.mxu0 %v4119_v10 }
 0xbf1   :  { %3880 = vmatpush3.bf16.msra.mxu1 %v4114_v29 }
 0xbf2   :  { %3893 = vmatprep.subr.bf16.mxu1 %v4116_v49 }
 0xcbf   :  { %v3875_v30 = vpop.f32.mrb[20].mxu1 }
 0xcc0   :  { %v1306_v31 = vpop.f32.mrb[21].mxu1 }
 0xcc1   :  { %v3876_v32 = vpop.f32.mrb[22].mxu1 }
 0xcc2   :  { %v1322_v33 = vpack.c.bf16 %v3876_v32, %v3875_v30  ;;  %v1309_v34 = vpop.f32.mrb[23].mxu1 }
 0xcc3   :  { %v1321_v35 = vpack.c.bf16 %v1309_v34, %v1306_v31 }
 0xcc5   :  { %3881 = vmatprep.mubr.msk.bf16.mxu1 %vm122_vm0, %v1321_v35 }
 0xcc6   :  { %3882 = vmatmul.mubr.msk.bf16.vlgmr.msra.gmra.mrb[24].mxu1 %vm122_vm0, %v1322_v33 }
 0xcc7   :  { %3894 = vmatpush3.bf16.msra.mxu1 %v4116_v49 }
 0xcc8   :  { %3895 = vmatprep.subr.bf16.mxu1 %v4118_v51 }
 0xccb   :  { %3896 = vmatpush3.bf16.msra.mxu1 %v4118_v51 }
 0xd99   :  { %v3883_v38 = vpop.f32.mrb[24].mxu1 }
 0xd9a   :  { %v1380_v39 = vpop.f32.mrb[25].mxu1  ;;  %v4841_v42 = vadd.f32 %v3883_v38, %v4767_v36 }
 0xd9b   :  { %v4844_v43 = vadd.f32 %v1380_v39, %v4770_v37  ;;  %v3884_v13 = vpop.f32.mrb[26].mxu1 }
 0xd9c   :  { %v1383_v14 = vpop.f32.mrb[27].mxu1  ;;  %v4847_v44 = vadd.f32 %v3884_v13, %v4773_v40  ;;  %v1401_v37 = vmul.f32 %v4841_v42, %v4841_v42 }
 0xd9d   :  { %v4850_v19 = vadd.f32 %v1383_v14, %v4776_v41  ;;  %v1399_v21 = vmul.f32 %v4844_v43, %v4844_v43 }
 0xd9e   :  { %v1402_v40 = vmul.f32 %v4847_v44, %v4847_v44  ;;  %v1409_v41 = vsel %vm122_vm0, %v1401_v37, 0.0 }
 0xd9f   :  { %v1403_v45 = vsel %vm122_vm0, %v1399_v21, 0.0  ;;  %v1400_v36 = vmul.f32 %v4850_v19, %v4850_v19 }
 0xda0   :  { %1404 = vadd.xlane.f32.xlu0 %v1403_v45  ;;  %v1412_v47 = vsel %vm122_vm0, %v1402_v40, 0.0 }
 0xda1   :  { %v1406_v46 = vsel %vm122_vm0, %v1400_v36, 0.0 }
 0xda2   :  { %1407 = vadd.xlane.f32.xlu1 %v1406_v46 }
 0xda4   :  { %1410 = vadd.xlane.f32.xlu0 %v1409_v41 }
 0xda6   :  { %1413 = vadd.xlane.f32.xlu1 %v1412_v47 }
 0xe2d   :  { %v1405_v52 = vpop.xlane.xlu0 %1404 }
 0xe2e   :  { %v1415_v53 = vmul.f32 0.03125, %v1405_v52 }
 0xe2f   :  { %v1408_v54 = vpop.xlane.xlu1 %1407 }
 0xe30   :  { %v1419_v9 = vadd.f32 1e-06, %v1415_v53  ;;  %v1416_v55 = vmul.f32 0.03125, %v1408_v54 }
 0xe31   :  { %v1411_v56 = vpop.xlane.xlu0 %1410 }
 0xe32   :  { %4229 = vrsqrt.f32 %v1419_v9  ;;  %v1420_v57 = vadd.f32 1e-06, %v1416_v55  ;;  %v1417_v15 = vmul.f32 0.03125, %v1411_v56 }
 0xe33   :  { %v1414_v16 = vpop.xlane.xlu1 %1413 }
 0xe34   :  { %4231 = vrsqrt.f32 %v1420_v57  ;;  %v1421_v58 = vadd.f32 1e-06, %v1417_v15  ;;  %v1418_v59 = vmul.f32 0.03125, %v1414_v16 }
 0xe36   :  { %4233 = vrsqrt.f32 %v1421_v58  ;;  %v1422_v60 = vadd.f32 1e-06, %v1418_v59 }
 0xe38   :  { %4235 = vrsqrt.f32 %v1422_v60 }
 0xe3c   :  { %v4230_v20 = vpop.eup %4229 }
 0xe3d   :  { %v1427_v62 = vmul.f32 %v4230_v20, %v4844_v43  ;;  %v4123_v20 = vld [vmem:[%s5171_s3 + $0x60] sm:$0xff]  }
 0xe3e   :  { %v4232_v61 = vpop.eup %4231  ;;  %3913 = vmatprep.subr.bf16.mxu1 %v4123_v20 }
 0xe3f   :  { %v1428_v63 = vmul.f32 %v4232_v61, %v4850_v19  ;;  %v4124_v61 = vld [vmem:[%s5171_s3 + $0x80] sm:$0xff]  }
 0xe40   :  { %v4234_v0 = vpop.eup %4233 }
 0xe41   :  { %v1431_v1 = vpack.c.bf16 %v1428_v63, %v1427_v62  ;;  %v1429_v4 = vmul.f32 %v4234_v0, %v4841_v42  ;;  %v4125_v62 = vld [vmem:[%s5171_s3 + $0x68] sm:$0xff]   ;;  %v4127_v0 = vld [vmem:[%s5171_s3 + $0x70] sm:$0xff]  }
 0xe42   :  { %v4236_v2 = vpop.eup %4235  ;;  %v4126_v63 = vld [vmem:[%s5171_s3 + $0x88] sm:$0xff]  }
 0xe43   :  { %v1430_v5 = vmul.f32 %v4236_v2, %v4847_v44  ;;  %3889 = vmatprep.mubr.msk.bf16.mxu0 %vm122_vm0, %v1431_v1  ;;  %3897 = vmatprep.mubr.msk.bf16.mxu1 %vm122_vm0, %v1431_v1 }
 0xe45   :  { %v1432_v6 = vpack.c.bf16 %v1430_v5, %v1429_v4 }
 0xe47   :  { %3890 = vmatmul.mubr.msk.bf16.vlgmr.msra.gmra.mrb[32].mxu0 %vm122_vm0, %v1432_v6  ;;  %3898 = vmatmul.mubr.msk.bf16.vlgmr.msra.gmra.mrb[28].mxu1 %vm122_vm0, %v1432_v6 }
 0xe48   :  { %3902 = vmatpush3.bf16.msra.mxu0 %v4119_v10  ;;  %3914 = vmatpush3.bf16.msra.mxu1 %v4123_v20 }
 0xe49   :  { %3903 = vmatprep.subr.bf16.mxu0 %v4120_v11  ;;  %3915 = vmatprep.subr.bf16.mxu1 %v4125_v62 }
 0xe4c   :  { %3904 = vmatpush3.bf16.msra.mxu0 %v4120_v11  ;;  %3916 = vmatpush3.bf16.msra.mxu1 %v4125_v62 }
 0xe4d   :  { %3905 = vmatprep.subr.bf16.mxu0 %v4121_v17  ;;  %3921 = vmatprep.subr.bf16.mxu1 %v4127_v0 }
 0xe50   :  { %3906 = vmatpush3.bf16.msra.mxu0 %v4121_v17 }
 0xe51   :  { %3907 = vmatprep.subr.bf16.mxu0 %v4122_v18 }
 0xe54   :  { %3908 = vmatpush3.bf16.msra.mxu0 %v4122_v18 }
 0xe55   :  { %3929 = vmatprep.subr.bf16.mxu0 %v4124_v61 }
 0xf1a   :  { %v3891_v22 = vpop.f32.mrb[32].mxu0  ;;  %v3899_v23 = vpop.f32.mrb[28].mxu1 }
 0xf1b   :  { %v3468_v3 = vmul.f32 -1.442695, %v3891_v22  ;;  %v1490_v7 = vpop.f32.mrb[33].mxu0  ;;  %v1556_v24 = vpop.f32.mrb[29].mxu1 }
 0xf1c   :  { %v3466_v8 = vmul.f32 -1.442695, %v1490_v7  ;;  %v3892_v12 = vpop.f32.mrb[34].mxu0  ;;  %v3900_v25 = vpop.f32.mrb[30].mxu1 }
 0xf1d   :  { %4237 = vpow2.f32 %v3468_v3  ;;  %v3469_v26 = vmul.f32 -1.442695, %v3892_v12  ;;  %v1493_v27 = vpop.f32.mrb[35].mxu0  ;;  %v1559_v28 = vpop.f32.mrb[31].mxu1 }
 0xf1e   :  { %4239 = vpow2.f32 %v3466_v8  ;;  %v3467_v29 = vmul.f32 -1.442695, %v1493_v27 }
 0xf1f   :  { %4241 = vpow2.f32 %v3469_v26 }
 0xf20   :  { %4243 = vpow2.f32 %v3467_v29 }
 0xf27   :  { %v4238_v30 = vpop.eup %4237 }
 0xf28   :  { %v4240_v31 = vpop.eup %4239  ;;  %v1585_v32 = vadd.f32 1.0, %v4238_v30 }
 0xf29   :  { %v4242_v33 = vpop.eup %4241  ;;  %v1583_v34 = vadd.f32 1.0, %v4240_v31  ;;  %v4128_v31 = vld [vmem:[%s5171_s3 + $0x78] sm:$0xff]  }
 0xf2a   :  { %v4244_v35 = vpop.eup %4243  ;;  %4245 = vrcp.f32 %v1585_v32  ;;  %v1586_v38 = vadd.f32 1.0, %v4242_v33 }
 0xf2b   :  { %4247 = vrcp.f32 %v1583_v34  ;;  %v1584_v39 = vadd.f32 1.0, %v4244_v35 }
 0xf2c   :  { %4249 = vrcp.f32 %v1586_v38 }
 0xf2d   :  { %4251 = vrcp.f32 %v1584_v39 }
 0xf34   :  { %v4246_v13 = vpop.eup %4245 }
 0xf35   :  { %v4248_v14 = vpop.eup %4247  ;;  %v1597_v21 = vmul.f32 %v4246_v13, %v3891_v22 }
 0xf36   :  { %v4250_v45 = vpop.eup %4249  ;;  %v1595_v36 = vmul.f32 %v4248_v14, %v1490_v7 }
 0xf37   :  { %v4252_v37 = vpop.eup %4251  ;;  %v1601_v46 = vmul.f32 %v3899_v23, %v1597_v21  ;;  %v1598_v40 = vmul.f32 %v4250_v45, %v3892_v12 }
 0xf38   :  { %v1599_v41 = vmul.f32 %v1595_v36, %v1556_v24  ;;  %v1596_v47 = vmul.f32 %v4252_v37, %v1493_v27 }
 0xf39   :  { %v1602_v48 = vmul.f32 %v3900_v25, %v1598_v40 }
 0xf3a   :  { %v1600_v49 = vmul.f32 %v1596_v47, %v1559_v28 }
 0xf3b   :  { %v1604_v50 = vpack.c.bf16 %v1602_v48, %v1601_v46 }
 0xf3c   :  { %v1603_v51 = vpack.c.bf16 %v1600_v49, %v1599_v41 }
 0xf3e   :  { %3909 = vmatprep.mubr.msk.bf16.mxu0 %vm847_vm1, %v1603_v51 }
 0xf3f   :  { %3910 = vmatmul.mubr.msk.bf16.vlgmr.msra.gmra.mrb[36].mxu0 %vm847_vm1, %v1604_v50 }
 0xf40   :  { %3930 = vmatpush3.bf16.msra.mxu0 %v4124_v61  ;;  %v4951_v61 = vld [vmem:[#allocation7 + $0x10] sm:$0xff] }
 0xf41   :  { %3931 = vmatprep.subr.bf16.mxu0 %v4126_v63 }
 0xf44   :  { %3932 = vmatpush3.bf16.msra.mxu0 %v4126_v63 }
0x1012   :  { %v3911_v52 = vpop.f32.mrb[36].mxu0 }
0x1013   :  { %v1678_v53 = vpop.f32.mrb[37].mxu0  ;;  %v4887_v54 = vadd.f32 %v3911_v52, %v4841_v42 }
0x1014   :  { %v4890_v9 = vadd.f32 %v1678_v53, %v4844_v43  ;;  %v3912_v55 = vpop.f32.mrb[38].mxu0 }
0x1015   :  { %v1681_v56 = vpop.f32.mrb[39].mxu0  ;;  %v4893_v57 = vadd.f32 %v3912_v55, %v4847_v44  ;;  %v1699_v43 = vmul.f32 %v4887_v54, %v4887_v54 }
0x1016   :  { %v4896_v15 = vadd.f32 %v1681_v56, %v4850_v19  ;;  %v1697_v16 = vmul.f32 %v4890_v9, %v4890_v9 }
0x1017   :  { %v1700_v44 = vmul.f32 %v4893_v57, %v4893_v57  ;;  %v1707_v19 = vsel %vm122_vm0, %v1699_v43, 0.0 }
0x1018   :  { %v1701_v58 = vsel %vm122_vm0, %v1697_v16, 0.0  ;;  %v1698_v42 = vmul.f32 %v4896_v15, %v4896_v15 }
0x1019   :  { %1702 = vadd.xlane.f32.xlu0 %v1701_v58  ;;  %v1710_v60 = vsel %vm122_vm0, %v1700_v44, 0.0 }
0x101a   :  { %v1704_v59 = vsel %vm122_vm0, %v1698_v42, 0.0 }
0x101b   :  { %1705 = vadd.xlane.f32.xlu1 %v1704_v59  ;;  %v4944_v59 = vld [vmem:[#allocation7] sm:$0xff] }
0x101d   :  { %1708 = vadd.xlane.f32.xlu0 %v1707_v19 }
0x101f   :  { %1711 = vadd.xlane.f32.xlu1 %v1710_v60  ;;  %v4948_v60 = vld [vmem:[#allocation7 + $0x8] sm:$0xff] }
0x10a6   :  { %v1703_v1 = vpop.xlane.xlu0 %1702 }
0x10a7   :  { %v1713_v2 = vmul.f32 0.03125, %v1703_v1 }
0x10a8   :  { %v1706_v4 = vpop.xlane.xlu1 %1705 }
0x10a9   :  { %v1717_v5 = vadd.f32 1e-06, %v1713_v2  ;;  %v1714_v6 = vmul.f32 0.03125, %v1706_v4 }
0x10aa   :  { %v1709_v10 = vpop.xlane.xlu0 %1708 }
0x10ab   :  { %4253 = vrsqrt.f32 %v1717_v5  ;;  %v1718_v11 = vadd.f32 1e-06, %v1714_v6  ;;  %v1715_v17 = vmul.f32 0.03125, %v1709_v10 }
0x10ac   :  { %v1712_v18 = vpop.xlane.xlu1 %1711 }
0x10ad   :  { %4255 = vrsqrt.f32 %v1718_v11  ;;  %v1719_v22 = vadd.f32 1e-06, %v1715_v17  ;;  %v1716_v23 = vmul.f32 0.03125, %v1712_v18 }
0x10af   :  { %4257 = vrsqrt.f32 %v1719_v22  ;;  %v1720_v3 = vadd.f32 1e-06, %v1716_v23 }
0x10b1   :  { %4259 = vrsqrt.f32 %v1720_v3 }
0x10b5   :  { %v4254_v7 = vpop.eup %4253 }
0x10b6   :  { %v1725_v8 = vmul.f32 %v4254_v7, %v4890_v9 }
0x10b7   :  { %v4256_v24 = vpop.eup %4255 }
0x10b8   :  { %v1726_v12 = vmul.f32 %v4256_v24, %v4896_v15 }
0x10b9   :  { %v4258_v25 = vpop.eup %4257 }
0x10ba   :  { %v1729_v26 = vpack.c.bf16 %v1726_v12, %v1725_v8  ;;  %v1727_v28 = vmul.f32 %v4258_v25, %v4887_v54 }
0x10bb   :  { %v4260_v27 = vpop.eup %4259 }
0x10bc   :  { %v1728_v29 = vmul.f32 %v4260_v27, %v4893_v57  ;;  %3917 = vmatprep.mubr.msk.bf16.mxu1 %vm122_vm0, %v1729_v26  ;;  %3933 = vmatprep.mubr.msk.bf16.mxu0 %vm122_vm0, %v1729_v26 }
0x10be   :  { %v1730_v30 = vpack.c.bf16 %v1728_v29, %v1727_v28 }
0x10c0   :  { %3918 = vmatmul.mubr.msk.bf16.vlgmr.msra.gmra.mrb[32].mxu1 %vm122_vm0, %v1730_v30  ;;  %3934 = vmatmul.mubr.msk.bf16.vlgmr.msra.gmra.mrb[40].mxu0 %vm122_vm0, %v1730_v30 }
0x10c1   :  { %3922 = vmatpush3.bf16.msra.mxu1 %v4127_v0  ;;  %3925 = vmatprep.mubr.msk.bf16.mxu1 %vm122_vm0, %v1729_v26  ;;  %v4955_v0 = vld [vmem:[#allocation7 + $0x18] sm:$0xff] }
0x10c2   :  { %3923 = vmatprep.subr.bf16.mxu1 %v4128_v31 }
0x10c5   :  { %3924 = vmatpush3.bf16.msra.mxu1 %v4128_v31 }
0x10c8   :  { %3926 = vmatmul.mubr.msk.bf16.vlgmr.msra.gmra.mrb[36].mxu1 %vm122_vm0, %v1730_v30 }
0x1193   :  { %v3919_v32 = vpop.f32.mrb[32].mxu1  ;;  %v3935_v33 = vpop.f32.mrb[40].mxu0 }
0x1194   :  { %v1788_v34 = vpop.f32.mrb[33].mxu1  ;;  %v1920_v35 = vpop.f32.mrb[41].mxu0 }
0x1195   :  { %v3920_v38 = vpop.f32.mrb[34].mxu1  ;;  %v3936_v39 = vpop.f32.mrb[42].mxu0 }
0x1196   :  { %v1936_v13 = vpack.c.bf16 %v3920_v38, %v3919_v32  ;;  %v2055_v14 = vpack.c.bf16 %v3936_v39, %v3935_v33  ;;  %v1791_v21 = vpop.f32.mrb[35].mxu1  ;;  %v1923_v45 = vpop.f32.mrb[43].mxu0  ;;  %v4129_v32 = vld [vmem:[#allocation8 + $0x20] sm:$0xff]  }
0x1197   :  { %v1935_v36 = vpack.c.bf16 %v1791_v21, %v1788_v34  ;;  %v2054_v37 = vpack.c.bf16 %v1923_v45, %v1920_v35 }
0x1199   :  { %3941 = vmatprep.mubr.msk.bf16.mxu1 %vm122_vm0, %v1935_v36  ;;  %3945 = vmatprep.subr.bf16.mxu0 %v2054_v37 }
0x119a   :  { %3946 = vmatpush3.bf16.msra.mxu0 %v2054_v37 }
0x119b   :  { %v3927_v46 = vpop.f32.mrb[36].mxu1  ;;  %3947 = vmatprep.subr.bf16.mxu0 %v2055_v14 }
0x119c   :  { %v1854_v40 = vpop.f32.mrb[37].mxu1 }
0x119d   :  { %v3928_v41 = vpop.f32.mrb[38].mxu1 }
0x119e   :  { %v1938_v47 = vpack.c.bf16 %v3928_v41, %v3927_v46  ;;  %v1857_v48 = vpop.f32.mrb[39].mxu1  ;;  %3948 = vmatpush3.bf16.msra.mxu0 %v2055_v14 }
0x119f   :  { %v1937_v49 = vpack.c.bf16 %v1857_v48, %v1854_v40  ;;  %3953 = vmatprep.subr.bf16.mxu0 %v4129_v32 }
0x11a0   :  { %v1949_v51 = vsel %vm122_vm0, %v1938_v47, 0 }
0x11a1   :  { %v1946_v50 = vsel %vm122_vm0, %v1937_v49, 0  ;;  %4077 = vmatprep.subr.msk.bf16.mxu1 %vm122_vm0, %v1937_v49 }
0x11a2   :  { %3938 = vmatpush3.bf16.xpose.msra.mxu1 %v1946_v50 }
0x11a3   :  { %4078 = vmatprep.subr.msk.bf16.mxu1 %vm122_vm0, %v1938_v47  ;;  %v4130_v47 = vld [vmem:[#allocation8 + $0x28] sm:$0xff]  }
0x11aa   :  { %3940 = vmatpush3.bf16.xpose.msra.mxu1 %v1949_v51 }
0x11b1   :  { %3942 = vmatmul.mubr.msk.bf16.vlgmr.msra.gmra.mrb[40].mxu1 %vm122_vm0, %v1936_v13 }
0x1284   :  { %v3943_v52 = vpop.f32.mrb[40].mxu1 }
0x1285   :  { %v1985_v53 = vpop.f32.mrb[41].mxu1  ;;  %v2002_v55 = vmul.f32 0.17677669, %v3943_v52 }
0x1286   :  { %v2000_v56 = vmul.f32 0.17677669, %v1985_v53  ;;  %v3944_v16 = vpop.f32.mrb[42].mxu1 }
0x1287   :  { %v1988_v58 = vpop.f32.mrb[43].mxu1  ;;  %v2003_v42 = vmul.f32 0.17677669, %v3944_v16  ;;  %v2006_v62 = vadd.f32 %v4951_v61, %v2002_v55 }
0x1288   :  { %v2001_v43 = vmul.f32 0.17677669, %v1988_v58  ;;  %v2004_v44 = vadd.f32 %v4944_v59, %v2000_v56 }
0x1289   :  { %v2007_v1 = vadd.f32 %v4955_v0, %v2003_v42  ;;  %v2014_v2 = vsel %vm122_vm0, %v2006_v62, -inf }
0x128a   :  { %v2008_v19 = vsel %vm122_vm0, %v2004_v44, -inf  ;;  %v2005_v20 = vadd.f32 %v4948_v60, %v2001_v43 }
0x128b   :  { %2009 = vmax.xlane.f32.xlu0 %v2008_v19  ;;  %v2017_v4 = vsel %vm122_vm0, %v2007_v1, -inf }
0x128c   :  { %v2011_v63 = vsel %vm122_vm0, %v2005_v20, -inf }
0x128d   :  { %2012 = vmax.xlane.f32.xlu1 %v2011_v63 }
0x128f   :  { %2015 = vmax.xlane.f32.xlu0 %v2014_v2  ;;  %v4131_v2 = vld [vmem:[#allocation10 + $0x40] sm:$0xff]  }
0x1290   :  { %3961 = vmatprep.subr.bf16.mxu1 %v4131_v2 }
0x1291   :  { %2018 = vmax.xlane.f32.xlu1 %v2017_v4  ;;  %v4132_v4 = vld [vmem:[#allocation10 + $0x50] sm:$0xff]   ;;  %3962 = vmatpush3.bf16.msra.mxu1 %v4131_v2 }
0x1318   :  { %v2010_v5 = vpop.xlane.xlu0 %2009 }
0x1319   :  { %v2020_v6 = vsub.f32 %v2004_v44, %v2010_v5  ;;  %v4133_v5 = vld [vmem:[#allocation10 + $0x48] sm:$0xff]  }
0x131a   :  { %v2013_v10 = vpop.xlane.xlu1 %2012  ;;  %3963 = vmatprep.subr.bf16.mxu1 %v4133_v5 }
0x131b   :  { %v2024_v11 = vmul.f32 1.442695, %v2020_v6  ;;  %v2021_v17 = vsub.f32 %v2005_v20, %v2013_v10  ;;  %v4134_v6 = vld [vmem:[#allocation10 + $0x58] sm:$0xff]   ;;  %3964 = vmatpush3.bf16.msra.mxu1 %v4133_v5 }
0x131c   :  { %v2016_v18 = vpop.xlane.xlu0 %2015 }
0x131d   :  { %4261 = vpow2.f32 %v2024_v11  ;;  %v2026_v22 = vmul.f32 1.442695, %v2021_v17  ;;  %v2022_v23 = vsub.f32 %v2006_v62, %v2016_v18 }
0x131e   :  { %v2019_v3 = vpop.xlane.xlu1 %2018 }
0x131f   :  { %4263 = vpow2.f32 %v2026_v22  ;;  %v2028_v7 = vmul.f32 1.442695, %v2022_v23  ;;  %v2023_v24 = vsub.f32 %v2007_v1, %v2019_v3 }
0x1321   :  { %4265 = vpow2.f32 %v2028_v7  ;;  %v2030_v8 = vmul.f32 1.442695, %v2023_v24 }
0x1323   :  { %4267 = vpow2.f32 %v2030_v8 }
0x1327   :  { %v4262_v12 = vpop.eup %4261 }
0x1328   :  { %v2032_v25 = vsel %vm122_vm0, %v4262_v12, 0.0 }
0x1329   :  { %v4264_v26 = vpop.eup %4263  ;;  %2033 = vadd.xlane.f32.xlu0 %v2032_v25 }
0x132a   :  { %v2035_v27 = vsel %vm122_vm0, %v4264_v26, 0.0 }
0x132b   :  { %v4266_v28 = vpop.eup %4265  ;;  %2036 = vadd.xlane.f32.xlu1 %v2035_v27 }
0x132c   :  { %v2038_v29 = vsel %vm122_vm0, %v4266_v28, 0.0 }
0x132d   :  { %v4268_v30 = vpop.eup %4267  ;;  %2039 = vadd.xlane.f32.xlu0 %v2038_v29 }
0x132e   :  { %v2041_v31 = vsel %vm122_vm0, %v4268_v30, 0.0 }
0x132f   :  { %2042 = vadd.xlane.f32.xlu1 %v2041_v31 }
0x13b6   :  { %v2034_v33 = vpop.xlane.xlu0 %2033 }
0x13b7   :  { %4269 = vrcp.f32 %v2034_v33 }
0x13b8   :  { %v2037_v34 = vpop.xlane.xlu1 %2036 }
0x13b9   :  { %4271 = vrcp.f32 %v2037_v34 }
0x13ba   :  { %v2040_v35 = vpop.xlane.xlu0 %2039 }
0x13bb   :  { %4273 = vrcp.f32 %v2040_v35 }
0x13bc   :  { %v2043_v38 = vpop.xlane.xlu1 %2042 }
0x13bd   :  { %4275 = vrcp.f32 %v2043_v38  ;;  %v4135_v38 = vld [vmem:[%s5174_s6 + $0x40] sm:$0xff]  }
0x13be   :  { %3977 = vmatprep.subr.bf16.mxu1 %v4135_v38 }
0x13c1   :  { %v4270_v39 = vpop.eup %4269 }
0x13c2   :  { %v2048_v14 = vmul.f32 %v4270_v39, %v4262_v12  ;;  %v4136_v39 = vld [vmem:[%s5174_s6 + $0x48] sm:$0xff]  }
0x13c3   :  { %v4272_v13 = vpop.eup %4271 }
0x13c4   :  { %v2049_v21 = vmul.f32 %v4272_v13, %v4264_v26  ;;  %v4137_v13 = vld [vmem:[%s5174_s6 + $0x50] sm:$0xff]  }
0x13c5   :  { %v4274_v45 = vpop.eup %4273 }
0x13c6   :  { %v2052_v36 = vpack.c.bf16 %v2049_v21, %v2048_v14  ;;  %v2050_v46 = vmul.f32 %v4274_v45, %v4266_v28  ;;  %v4138_v14 = vld [vmem:[%s5174_s6 + $0x58] sm:$0xff]  }
0x13c7   :  { %v4276_v37 = vpop.eup %4275 }
0x13c8   :  { %v2051_v40 = vmul.f32 %v4276_v37, %v4268_v30  ;;  %3949 = vmatprep.mubr.msk.bf16.mxu0 %vm122_vm0, %v2052_v36 }
0x13ca   :  { %v2053_v41 = vpack.c.bf16 %v2051_v40, %v2050_v46 }
0x13cc   :  { %3950 = vmatmul.mubr.msk.bf16.vlgmr.msra.gmra.mrb[44].mxu0 %vm122_vm0, %v2053_v41 }
0x13cd   :  { %3954 = vmatpush3.bf16.msra.mxu0 %v4129_v32 }
0x13ce   :  { %3955 = vmatprep.subr.bf16.mxu0 %v4130_v47 }
0x13d1   :  { %3956 = vmatpush3.bf16.msra.mxu0 %v4130_v47 }
0x13d2   :  { %3969 = vmatprep.subr.bf16.mxu0 %v4132_v4 }
0x149f   :  { %v3951_v48 = vpop.f32.mrb[44].mxu0 }
0x14a0   :  { %v2096_v49 = vpop.f32.mrb[45].mxu0 }
0x14a1   :  { %v3952_v50 = vpop.f32.mrb[46].mxu0 }
0x14a2   :  { %v2112_v51 = vpack.c.bf16 %v3952_v50, %v3951_v48  ;;  %v2099_v52 = vpop.f32.mrb[47].mxu0 }
0x14a3   :  { %v2111_v53 = vpack.c.bf16 %v2099_v52, %v2096_v49 }
0x14a5   :  { %3957 = vmatprep.mubr.msk.bf16.mxu0 %vm122_vm0, %v2111_v53 }
0x14a6   :  { %3958 = vmatmul.mubr.msk.bf16.vlgmr.msra.gmra.mrb[48].mxu0 %vm122_vm0, %v2112_v51 }
0x14a7   :  { %3970 = vmatpush3.bf16.msra.mxu0 %v4132_v4 }
0x14a8   :  { %3971 = vmatprep.subr.bf16.mxu0 %v4134_v6 }
0x14ab   :  { %3972 = vmatpush3.bf16.msra.mxu0 %v4134_v6 }
0x1579   :  { %v3959_v55 = vpop.f32.mrb[48].mxu0 }
0x157a   :  { %v2170_v56 = vpop.f32.mrb[49].mxu0  ;;  %v4969_v16 = vadd.f32 %v3959_v55, %v4887_v54 }
0x157b   :  { %v4972_v58 = vadd.f32 %v2170_v56, %v4890_v9  ;;  %v3960_v42 = vpop.f32.mrb[50].mxu0 }
0x157c   :  { %v2173_v43 = vpop.f32.mrb[51].mxu0  ;;  %v4975_v44 = vadd.f32 %v3960_v42, %v4893_v57  ;;  %v2191_v9 = vmul.f32 %v4969_v16, %v4969_v16 }
0x157d   :  { %v4978_v19 = vadd.f32 %v2173_v43, %v4896_v15  ;;  %v2189_v20 = vmul.f32 %v4972_v58, %v4972_v58 }
0x157e   :  { %v2192_v57 = vmul.f32 %v4975_v44, %v4975_v44  ;;  %v2199_v15 = vsel %vm122_vm0, %v2191_v9, 0.0 }
0x157f   :  { %v2193_v62 = vsel %vm122_vm0, %v2189_v20, 0.0  ;;  %v2190_v54 = vmul.f32 %v4978_v19, %v4978_v19 }
0x1580   :  { %2194 = vadd.xlane.f32.xlu0 %v2193_v62  ;;  %v2202_v1 = vsel %vm122_vm0, %v2192_v57, 0.0 }
0x1581   :  { %v2196_v63 = vsel %vm122_vm0, %v2190_v54, 0.0 }
0x1582   :  { %2197 = vadd.xlane.f32.xlu1 %v2196_v63 }
0x1584   :  { %2200 = vadd.xlane.f32.xlu0 %v2199_v15 }
0x1586   :  { %2203 = vadd.xlane.f32.xlu1 %v2202_v1 }
0x160d   :  { %v2195_v10 = vpop.xlane.xlu0 %2194 }
0x160e   :  { %v2205_v11 = vmul.f32 0.03125, %v2195_v10 }
0x160f   :  { %v2198_v17 = vpop.xlane.xlu1 %2197 }
0x1610   :  { %v2209_v18 = vadd.f32 1e-06, %v2205_v11  ;;  %v2206_v22 = vmul.f32 0.03125, %v2198_v17 }
0x1611   :  { %v2201_v23 = vpop.xlane.xlu0 %2200 }
0x1612   :  { %4277 = vrsqrt.f32 %v2209_v18  ;;  %v2210_v3 = vadd.f32 1e-06, %v2206_v22  ;;  %v2207_v7 = vmul.f32 0.03125, %v2201_v23 }
0x1613   :  { %v2204_v24 = vpop.xlane.xlu1 %2203 }
0x1614   :  { %4279 = vrsqrt.f32 %v2210_v3  ;;  %v2211_v8 = vadd.f32 1e-06, %v2207_v7  ;;  %v2208_v12 = vmul.f32 0.03125, %v2204_v24 }
0x1616   :  { %4281 = vrsqrt.f32 %v2211_v8  ;;  %v2212_v25 = vadd.f32 1e-06, %v2208_v12 }
0x1618   :  { %4283 = vrsqrt.f32 %v2212_v25 }
0x161c   :  { %v4278_v26 = vpop.eup %4277 }
0x161d   :  { %v2217_v28 = vmul.f32 %v4278_v26, %v4972_v58 }
0x161e   :  { %v4280_v27 = vpop.eup %4279 }
0x161f   :  { %v2218_v29 = vmul.f32 %v4280_v27, %v4978_v19 }
0x1620   :  { %v4282_v30 = vpop.eup %4281 }
0x1621   :  { %v2221_v31 = vpack.c.bf16 %v2218_v29, %v2217_v28  ;;  %v2219_v33 = vmul.f32 %v4282_v30, %v4969_v16  ;;  %v4139_v30 = vld [vmem:[%s5171_s3 + $0x90] sm:$0xff]  }
0x1622   :  { %v4284_v32 = vpop.eup %4283  ;;  %3989 = vmatprep.subr.bf16.mxu0 %v4139_v30 }
0x1623   :  { %v2220_v34 = vmul.f32 %v4284_v32, %v4975_v44  ;;  %3965 = vmatprep.mubr.msk.bf16.mxu1 %vm122_vm0, %v2221_v31  ;;  %3973 = vmatprep.mubr.msk.bf16.mxu0 %vm122_vm0, %v2221_v31  ;;  %v4140_v31 = vld [vmem:[%s5171_s3 + $0xb0] sm:$0xff]   ;;  %v4141_v32 = vld [vmem:[%s5171_s3 + $0x98] sm:$0xff]  }
0x1625   :  { %v2222_v35 = vpack.c.bf16 %v2220_v34, %v2219_v33  ;;  %v4142_v33 = vld [vmem:[%s5171_s3 + $0xb8] sm:$0xff]   ;;  %v4143_v34 = vld [vmem:[%s5171_s3 + $0xa0] sm:$0xff]  }
0x1627   :  { %3966 = vmatmul.mubr.msk.bf16.vlgmr.msra.gmra.mrb[44].mxu1 %vm122_vm0, %v2222_v35  ;;  %3974 = vmatmul.mubr.msk.bf16.vlgmr.msra.gmra.mrb[52].mxu0 %vm122_vm0, %v2222_v35 }
0x1628   :  { %3978 = vmatpush3.bf16.msra.mxu1 %v4135_v38  ;;  %3990 = vmatpush3.bf16.msra.mxu0 %v4139_v30 }
0x1629   :  { %3979 = vmatprep.subr.bf16.mxu1 %v4136_v39  ;;  %3991 = vmatprep.subr.bf16.mxu0 %v4141_v32 }
0x162c   :  { %3980 = vmatpush3.bf16.msra.mxu1 %v4136_v39  ;;  %3992 = vmatpush3.bf16.msra.mxu0 %v4141_v32 }
0x162d   :  { %3981 = vmatprep.subr.bf16.mxu1 %v4137_v13  ;;  %3997 = vmatprep.subr.bf16.mxu0 %v4143_v34 }
0x1630   :  { %3982 = vmatpush3.bf16.msra.mxu1 %v4137_v13 }
0x1631   :  { %3983 = vmatprep.subr.bf16.mxu1 %v4138_v14 }
0x1634   :  { %3984 = vmatpush3.bf16.msra.mxu1 %v4138_v14 }
0x1635   :  { %4005 = vmatprep.subr.bf16.mxu1 %v4140_v31 }
0x16fa   :  { %v3967_v21 = vpop.f32.mrb[44].mxu1  ;;  %v3975_v45 = vpop.f32.mrb[52].mxu0 }
0x16fb   :  { %v3526_v36 = vmul.f32 -1.442695, %v3967_v21  ;;  %v2280_v37 = vpop.f32.mrb[45].mxu1  ;;  %v2346_v46 = vpop.f32.mrb[53].mxu0 }
0x16fc   :  { %v3524_v40 = vmul.f32 -1.442695, %v2280_v37  ;;  %v3968_v41 = vpop.f32.mrb[46].mxu1  ;;  %v3976_v47 = vpop.f32.mrb[54].mxu0 }
0x16fd   :  { %4285 = vpow2.f32 %v3526_v36  ;;  %v3527_v48 = vmul.f32 -1.442695, %v3968_v41  ;;  %v2283_v49 = vpop.f32.mrb[47].mxu1  ;;  %v2349_v50 = vpop.f32.mrb[55].mxu0 }
0x16fe   :  { %4287 = vpow2.f32 %v3524_v40  ;;  %v3525_v51 = vmul.f32 -1.442695, %v2283_v49 }
0x16ff   :  { %4289 = vpow2.f32 %v3527_v48 }
0x1700   :  { %4291 = vpow2.f32 %v3525_v51 }
0x1707   :  { %v4286_v52 = vpop.eup %4285 }
0x1708   :  { %v4288_v53 = vpop.eup %4287  ;;  %v2375_v55 = vadd.f32 1.0, %v4286_v52 }
0x1709   :  { %v4290_v56 = vpop.eup %4289  ;;  %v2373_v42 = vadd.f32 1.0, %v4288_v53 }
0x170a   :  { %v4292_v43 = vpop.eup %4291  ;;  %4293 = vrcp.f32 %v2375_v55  ;;  %v2376_v20 = vadd.f32 1.0, %v4290_v56 }
0x170b   :  { %4295 = vrcp.f32 %v2373_v42  ;;  %v2374_v62 = vadd.f32 1.0, %v4292_v43  ;;  %v4144_v43 = vld [vmem:[%s5171_s3 + $0xa8] sm:$0xff]  }
0x170c   :  { %4297 = vrcp.f32 %v2376_v20 }
0x170d   :  { %4299 = vrcp.f32 %v2374_v62 }
0x1714   :  { %v4294_v54 = vpop.eup %4293 }
0x1715   :  { %v4296_v9 = vpop.eup %4295  ;;  %v2387_v63 = vmul.f32 %v4294_v54, %v3967_v21 }
0x1716   :  { %v4298_v57 = vpop.eup %4297  ;;  %v2385_v15 = vmul.f32 %v4296_v9, %v2280_v37 }
0x1717   :  { %v4300_v1 = vpop.eup %4299  ;;  %v2391_v2 = vmul.f32 %v3975_v45, %v2387_v63  ;;  %v2388_v4 = vmul.f32 %v4298_v57, %v3968_v41 }
0x1718   :  { %v2389_v5 = vmul.f32 %v2385_v15, %v2346_v46  ;;  %v2386_v6 = vmul.f32 %v4300_v1, %v2283_v49 }
0x1719   :  { %v2392_v10 = vmul.f32 %v3976_v47, %v2388_v4 }
0x171a   :  { %v2390_v11 = vmul.f32 %v2386_v6, %v2349_v50 }
0x171b   :  { %v2394_v17 = vpack.c.bf16 %v2392_v10, %v2391_v2 }
0x171c   :  { %v2393_v18 = vpack.c.bf16 %v2390_v11, %v2389_v5 }
0x171e   :  { %3985 = vmatprep.mubr.msk.bf16.mxu1 %vm847_vm1, %v2393_v18 }
0x171f   :  { %3986 = vmatmul.mubr.msk.bf16.vlgmr.msra.gmra.mrb[48].mxu1 %vm847_vm1, %v2394_v17 }
0x1720   :  { %4006 = vmatpush3.bf16.msra.mxu1 %v4140_v31 }
0x1721   :  { %4007 = vmatprep.subr.bf16.mxu1 %v4142_v33 }
0x1724   :  { %4008 = vmatpush3.bf16.msra.mxu1 %v4142_v33 }
0x17f2   :  { %v3987_v22 = vpop.f32.mrb[48].mxu1 }
0x17f3   :  { %v2468_v23 = vpop.f32.mrb[49].mxu1  ;;  %v5015_v3 = vadd.f32 %v3987_v22, %v4969_v16 }
0x17f4   :  { %v5018_v7 = vadd.f32 %v2468_v23, %v4972_v58  ;;  %v3988_v24 = vpop.f32.mrb[50].mxu1 }
0x17f5   :  { %v2471_v8 = vpop.f32.mrb[51].mxu1  ;;  %v5021_v12 = vadd.f32 %v3988_v24, %v4975_v44  ;;  %v2489_v58 = vmul.f32 %v5015_v3, %v5015_v3 }
0x17f6   :  { %v5024_v25 = vadd.f32 %v2471_v8, %v4978_v19  ;;  %v2487_v26 = vmul.f32 %v5018_v7, %v5018_v7 }
0x17f7   :  { %v2490_v44 = vmul.f32 %v5021_v12, %v5021_v12  ;;  %v2497_v19 = vsel %vm122_vm0, %v2489_v58, 0.0 }
0x17f8   :  { %v2491_v27 = vsel %vm122_vm0, %v2487_v26, 0.0  ;;  %v2488_v16 = vmul.f32 %v5024_v25, %v5024_v25 }
0x17f9   :  { %2492 = vadd.xlane.f32.xlu0 %v2491_v27  ;;  %v2500_v29 = vsel %vm122_vm0, %v2490_v44, 0.0 }
0x17fa   :  { %v2494_v28 = vsel %vm122_vm0, %v2488_v16, 0.0 }
0x17fb   :  { %2495 = vadd.xlane.f32.xlu1 %v2494_v28 }
0x17fd   :  { %2498 = vadd.xlane.f32.xlu0 %v2497_v19 }
0x17ff   :  { %2501 = vadd.xlane.f32.xlu1 %v2500_v29 }
0x1886   :  { %v2493_v35 = vpop.xlane.xlu0 %2492 }
0x1887   :  { %v2503_v38 = vmul.f32 0.03125, %v2493_v35 }
0x1888   :  { %v2496_v39 = vpop.xlane.xlu1 %2495 }
0x1889   :  { %v2507_v13 = vadd.f32 1e-06, %v2503_v38  ;;  %v2504_v14 = vmul.f32 0.03125, %v2496_v39 }
0x188a   :  { %v2499_v21 = vpop.xlane.xlu0 %2498 }
0x188b   :  { %4301 = vrsqrt.f32 %v2507_v13  ;;  %v2508_v45 = vadd.f32 1e-06, %v2504_v14  ;;  %v2505_v36 = vmul.f32 0.03125, %v2499_v21 }
0x188c   :  { %v2502_v37 = vpop.xlane.xlu1 %2501 }
0x188d   :  { %4303 = vrsqrt.f32 %v2508_v45  ;;  %v2509_v46 = vadd.f32 1e-06, %v2505_v36  ;;  %v2506_v40 = vmul.f32 0.03125, %v2502_v37 }
0x188f   :  { %4305 = vrsqrt.f32 %v2509_v46  ;;  %v2510_v41 = vadd.f32 1e-06, %v2506_v40 }
0x1891   :  { %4307 = vrsqrt.f32 %v2510_v41 }
0x1895   :  { %v4302_v47 = vpop.eup %4301 }
0x1896   :  { %v2515_v49 = vmul.f32 %v4302_v47, %v5018_v7 }
0x1897   :  { %v4304_v48 = vpop.eup %4303 }
0x1898   :  { %v2516_v50 = vmul.f32 %v4304_v48, %v5024_v25 }
0x1899   :  { %v4306_v51 = vpop.eup %4305 }
0x189a   :  { %v2519_v52 = vpack.c.bf16 %v2516_v50, %v2515_v49  ;;  %v2517_v55 = vmul.f32 %v4306_v51, %v5015_v3 }
0x189b   :  { %v4308_v53 = vpop.eup %4307 }
0x189c   :  { %v2518_v56 = vmul.f32 %v4308_v53, %v5021_v12  ;;  %3993 = vmatprep.mubr.msk.bf16.mxu0 %vm122_vm0, %v2519_v52  ;;  %4009 = vmatprep.mubr.msk.bf16.mxu1 %vm122_vm0, %v2519_v52 }
0x189e   :  { %v2520_v42 = vpack.c.bf16 %v2518_v56, %v2517_v55  ;;  %v4145_v55 = vld [vmem:[#allocation8 + $0x30] sm:$0xff]  }
0x18a0   :  { %3994 = vmatmul.mubr.msk.bf16.vlgmr.msra.gmra.mrb[56].mxu0 %vm122_vm0, %v2520_v42  ;;  %4010 = vmatmul.mubr.msk.bf16.vlgmr.msra.gmra.mrb[52].mxu1 %vm122_vm0, %v2520_v42 }
0x18a1   :  { %3998 = vmatpush3.bf16.msra.mxu0 %v4143_v34  ;;  %4001 = vmatprep.mubr.msk.bf16.mxu0 %vm122_vm0, %v2519_v52 }
0x18a2   :  { %3999 = vmatprep.subr.bf16.mxu0 %v4144_v43 }
0x18a5   :  { %4000 = vmatpush3.bf16.msra.mxu0 %v4144_v43 }
0x18a8   :  { %4002 = vmatmul.mubr.msk.bf16.vlgmr.msra.gmra.mrb[60].mxu0 %vm122_vm0, %v2520_v42 }
0x1973   :  { %v3995_v20 = vpop.f32.mrb[56].mxu0  ;;  %v4011_v62 = vpop.f32.mrb[52].mxu1 }
0x1974   :  { %v2578_v54 = vpop.f32.mrb[57].mxu0  ;;  %v2710_v9 = vpop.f32.mrb[53].mxu1 }
0x1975   :  { %v3996_v63 = vpop.f32.mrb[58].mxu0  ;;  %v4012_v57 = vpop.f32.mrb[54].mxu1 }
0x1976   :  { %v2726_v15 = vpack.c.bf16 %v3996_v63, %v3995_v20  ;;  %v2845_v1 = vpack.c.bf16 %v4012_v57, %v4011_v62  ;;  %v2581_v2 = vpop.f32.mrb[59].mxu0  ;;  %v2713_v4 = vpop.f32.mrb[55].mxu1 }
0x1977   :  { %v2725_v5 = vpack.c.bf16 %v2581_v2, %v2578_v54  ;;  %v2844_v6 = vpack.c.bf16 %v2713_v4, %v2710_v9 }
0x1979   :  { %4017 = vmatprep.mubr.msk.bf16.mxu0 %vm122_vm0, %v2725_v5  ;;  %4021 = vmatprep.subr.bf16.mxu1 %v2844_v6 }
0x197a   :  { %4022 = vmatpush3.bf16.msra.mxu1 %v2844_v6  ;;  %v4146_v6 = vld [vmem:[#allocation8 + $0x38] sm:$0xff]  }
0x197b   :  { %v4003_v10 = vpop.f32.mrb[60].mxu0  ;;  %4023 = vmatprep.subr.bf16.mxu1 %v2845_v1 }
0x197c   :  { %v2644_v11 = vpop.f32.mrb[61].mxu0 }
0x197d   :  { %v4004_v17 = vpop.f32.mrb[62].mxu0 }
0x197e   :  { %v2728_v18 = vpack.c.bf16 %v4004_v17, %v4003_v10  ;;  %v2647_v22 = vpop.f32.mrb[63].mxu0  ;;  %4024 = vmatpush3.bf16.msra.mxu1 %v2845_v1 }
0x197f   :  { %v2727_v23 = vpack.c.bf16 %v2647_v22, %v2644_v11  ;;  %4029 = vmatprep.subr.bf16.mxu1 %v4145_v55 }
0x1980   :  { %v2739_v8 = vsel %vm122_vm0, %v2728_v18, 0 }
0x1981   :  { %v2736_v24 = vsel %vm122_vm0, %v2727_v23, 0  ;;  %4079 = vmatprep.subr.msk.bf16.mxu0 %vm122_vm0, %v2727_v23 }
0x1982   :  { %4014 = vmatpush3.bf16.xpose.msra.mxu0 %v2736_v24 }
0x1983   :  { %4080 = vmatprep.subr.msk.bf16.mxu0 %vm122_vm0, %v2728_v18 }
0x198a   :  { %4016 = vmatpush3.bf16.xpose.msra.mxu0 %v2739_v8 }
0x1991   :  { %4018 = vmatmul.mubr.msk.bf16.vlgmr.msra.gmra.mrb[64].mxu0 %vm122_vm0, %v2726_v15 }
0x1a64   :  { %v4019_v26 = vpop.f32.mrb[64].mxu0 }
0x1a65   :  { %v2775_v27 = vpop.f32.mrb[65].mxu0  ;;  %v2792_v16 = vmul.f32 0.17677669, %v4019_v26 }
0x1a66   :  { %v2790_v58 = vmul.f32 0.17677669, %v2775_v27  ;;  %v4020_v28 = vpop.f32.mrb[66].mxu0 }
0x1a67   :  { %v2778_v44 = vpop.f32.mrb[67].mxu0  ;;  %v2793_v19 = vmul.f32 0.17677669, %v4020_v28  ;;  %v2796_v33 = vadd.f32 %v4951_v61, %v2792_v16 }
0x1a68   :  { %v2791_v29 = vmul.f32 0.17677669, %v2778_v44  ;;  %v2794_v30 = vadd.f32 %v4944_v59, %v2790_v58 }
0x1a69   :  { %v2797_v35 = vadd.f32 %v4955_v0, %v2793_v19  ;;  %v2804_v38 = vsel %vm122_vm0, %v2796_v33, -inf }
0x1a6a   :  { %v2798_v31 = vsel %vm122_vm0, %v2794_v30, -inf  ;;  %v2795_v32 = vadd.f32 %v4948_v60, %v2791_v29 }
0x1a6b   :  { %2799 = vmax.xlane.f32.xlu0 %v2798_v31  ;;  %v2807_v39 = vsel %vm122_vm0, %v2797_v35, -inf }
0x1a6c   :  { %v2801_v34 = vsel %vm122_vm0, %v2795_v32, -inf }
0x1a6d   :  { %2802 = vmax.xlane.f32.xlu1 %v2801_v34  ;;  %v4149_v34 = vld [vmem:[#allocation10 + $0x68] sm:$0xff]  }
0x1a6f   :  { %2805 = vmax.xlane.f32.xlu0 %v2804_v38 }
0x1a71   :  { %2808 = vmax.xlane.f32.xlu1 %v2807_v39 }
0x1af8   :  { %v2800_v13 = vpop.xlane.xlu0 %2799 }
0x1af9   :  { %v2810_v59 = vsub.f32 %v2794_v30, %v2800_v13 }
0x1afa   :  { %v2803_v14 = vpop.xlane.xlu1 %2802 }
0x1afb   :  { %v2814_v21 = vmul.f32 1.442695, %v2810_v59  ;;  %v2811_v45 = vsub.f32 %v2795_v32, %v2803_v14  ;;  %v4147_v32 = vld [vmem:[#allocation10 + $0x60] sm:$0xff]  }
0x1afc   :  { %v2806_v60 = vpop.xlane.xlu0 %2805  ;;  %4037 = vmatprep.subr.bf16.mxu0 %v4147_v32 }
0x1afd   :  { %4309 = vpow2.f32 %v2814_v21  ;;  %v2816_v61 = vmul.f32 1.442695, %v2811_v45  ;;  %v2812_v36 = vsub.f32 %v2796_v33, %v2806_v60  ;;  %v4148_v33 = vld [vmem:[#allocation10 + $0x70] sm:$0xff]   ;;  %4038 = vmatpush3.bf16.msra.mxu0 %v4147_v32 }
0x1afe   :  { %v2809_v37 = vpop.xlane.xlu1 %2808  ;;  %4039 = vmatprep.subr.bf16.mxu0 %v4149_v34 }
0x1aff   :  { %4311 = vpow2.f32 %v2816_v61  ;;  %v2818_v46 = vmul.f32 1.442695, %v2812_v36  ;;  %v2813_v0 = vsub.f32 %v2797_v35, %v2809_v37  ;;  %v4150_v35 = vld [vmem:[#allocation10 + $0x78] sm:$0xff]  }
0x1b01   :  { %4313 = vpow2.f32 %v2818_v46  ;;  %v2820_v40 = vmul.f32 1.442695, %v2813_v0  ;;  %4040 = vmatpush3.bf16.msra.mxu0 %v4149_v34 }
0x1b03   :  { %4315 = vpow2.f32 %v2820_v40 }
0x1b07   :  { %v4310_v41 = vpop.eup %4309 }
0x1b08   :  { %v2822_v47 = vsel %vm122_vm0, %v4310_v41, 0.0 }
0x1b09   :  { %v4312_v48 = vpop.eup %4311  ;;  %2823 = vadd.xlane.f32.xlu0 %v2822_v47 }
0x1b0a   :  { %v2825_v49 = vsel %vm122_vm0, %v4312_v48, 0.0 }
0x1b0b   :  { %v4314_v50 = vpop.eup %4313  ;;  %2826 = vadd.xlane.f32.xlu1 %v2825_v49 }
0x1b0c   :  { %v2828_v51 = vsel %vm122_vm0, %v4314_v50, 0.0 }
0x1b0d   :  { %v4316_v52 = vpop.eup %4315  ;;  %2829 = vadd.xlane.f32.xlu0 %v2828_v51 }
0x1b0e   :  { %v2831_v53 = vsel %vm122_vm0, %v4316_v52, 0.0 }
0x1b0f   :  { %2832 = vadd.xlane.f32.xlu1 %v2831_v53 }
0x1b96   :  { %v2824_v56 = vpop.xlane.xlu0 %2823 }
0x1b97   :  { %4317 = vrcp.f32 %v2824_v56  ;;  %v4152_v56 = vld [vmem:[%s5174_s6 + $0x68] sm:$0xff]  }
0x1b98   :  { %v2827_v42 = vpop.xlane.xlu1 %2826 }
0x1b99   :  { %4319 = vrcp.f32 %v2827_v42  ;;  %v4153_v42 = vld [vmem:[%s5174_s6 + $0x70] sm:$0xff]  }
0x1b9a   :  { %v2830_v43 = vpop.xlane.xlu0 %2829 }
0x1b9b   :  { %4321 = vrcp.f32 %v2830_v43  ;;  %v4154_v43 = vld [vmem:[%s5174_s6 + $0x78] sm:$0xff]  }
0x1b9c   :  { %v2833_v20 = vpop.xlane.xlu1 %2832 }
0x1b9d   :  { %4323 = vrcp.f32 %v2833_v20 }
0x1ba1   :  { %v4318_v62 = vpop.eup %4317 }
0x1ba2   :  { %v2838_v9 = vmul.f32 %v4318_v62, %v4310_v41 }
0x1ba3   :  { %v4320_v54 = vpop.eup %4319 }
0x1ba4   :  { %v2839_v63 = vmul.f32 %v4320_v54, %v4312_v48 }
0x1ba5   :  { %v4322_v57 = vpop.eup %4321 }
0x1ba6   :  { %v2842_v15 = vpack.c.bf16 %v2839_v63, %v2838_v9  ;;  %v2840_v2 = vmul.f32 %v4322_v57, %v4314_v50 }
0x1ba7   :  { %v4324_v1 = vpop.eup %4323 }
0x1ba8   :  { %v2841_v4 = vmul.f32 %v4324_v1, %v4316_v52  ;;  %4025 = vmatprep.mubr.msk.bf16.mxu1 %vm122_vm0, %v2842_v15 }
0x1baa   :  { %v2843_v5 = vpack.c.bf16 %v2841_v4, %v2840_v2 }
0x1bac   :  { %4026 = vmatmul.mubr.msk.bf16.vlgmr.msra.gmra.mrb[56].mxu1 %vm122_vm0, %v2843_v5 }
0x1bad   :  { %4030 = vmatpush3.bf16.msra.mxu1 %v4145_v55  ;;  %v4151_v55 = vld [vmem:[%s5174_s6 + $0x60] sm:$0xff]  }
0x1bae   :  { %4031 = vmatprep.subr.bf16.mxu1 %v4146_v6  ;;  %4053 = vmatprep.subr.bf16.mxu0 %v4151_v55 }
0x1bb1   :  { %4032 = vmatpush3.bf16.msra.mxu1 %v4146_v6 }
0x1bb2   :  { %4045 = vmatprep.subr.bf16.mxu1 %v4148_v33 }
0x1c7f   :  { %v4027_v10 = vpop.f32.mrb[56].mxu1 }
0x1c80   :  { %v2886_v11 = vpop.f32.mrb[57].mxu1 }
0x1c81   :  { %v4028_v17 = vpop.f32.mrb[58].mxu1 }
0x1c82   :  { %v2902_v18 = vpack.c.bf16 %v4028_v17, %v4027_v10  ;;  %v2889_v22 = vpop.f32.mrb[59].mxu1 }
0x1c83   :  { %v2901_v23 = vpack.c.bf16 %v2889_v22, %v2886_v11 }
0x1c85   :  { %4033 = vmatprep.mubr.msk.bf16.mxu1 %vm122_vm0, %v2901_v23 }
0x1c86   :  { %4034 = vmatmul.mubr.msk.bf16.vlgmr.msra.gmra.mrb[60].mxu1 %vm122_vm0, %v2902_v18 }
0x1c87   :  { %4046 = vmatpush3.bf16.msra.mxu1 %v4148_v33 }
0x1c88   :  { %4047 = vmatprep.subr.bf16.mxu1 %v4150_v35 }
0x1c8b   :  { %4048 = vmatpush3.bf16.msra.mxu1 %v4150_v35 }
0x1d59   :  { %v4035_v24 = vpop.f32.mrb[60].mxu1 }
0x1d5a   :  { %v2960_v8 = vpop.f32.mrb[61].mxu1  ;;  %v5089_v26 = vadd.f32 %v4035_v24, %v5015_v3 }
0x1d5b   :  { %v5092_v27 = vadd.f32 %v2960_v8, %v5018_v7  ;;  %v4036_v16 = vpop.f32.mrb[62].mxu1 }
0x1d5c   :  { %v2963_v58 = vpop.f32.mrb[63].mxu1  ;;  %v5095_v28 = vadd.f32 %v4036_v16, %v5021_v12  ;;  %v2981_v7 = vmul.f32 %v5089_v26, %v5089_v26 }
0x1d5d   :  { %v5098_v44 = vadd.f32 %v2963_v58, %v5024_v25  ;;  %v2979_v19 = vmul.f32 %v5092_v27, %v5092_v27 }
0x1d5e   :  { %v2982_v12 = vmul.f32 %v5095_v28, %v5095_v28  ;;  %v2989_v25 = vsel %vm122_vm0, %v2981_v7, 0.0 }
0x1d5f   :  { %v2983_v29 = vsel %vm122_vm0, %v2979_v19, 0.0  ;;  %v2980_v3 = vmul.f32 %v5098_v44, %v5098_v44 }
0x1d60   :  { %2984 = vadd.xlane.f32.xlu0 %v2983_v29  ;;  %v2992_v31 = vsel %vm122_vm0, %v2982_v12, 0.0 }
0x1d61   :  { %v2986_v30 = vsel %vm122_vm0, %v2980_v3, 0.0 }
0x1d62   :  { %2987 = vadd.xlane.f32.xlu1 %v2986_v30 }
0x1d64   :  { %2990 = vadd.xlane.f32.xlu0 %v2989_v25 }
0x1d66   :  { %2993 = vadd.xlane.f32.xlu1 %v2992_v31 }
0x1ded   :  { %v2985_v38 = vpop.xlane.xlu0 %2984 }
0x1dee   :  { %v2995_v39 = vmul.f32 0.03125, %v2985_v38  ;;  %v4155_v38 = vld [vmem:[%s5175_s7] sm:$0xff]  }
0x1def   :  { %v2988_v13 = vpop.xlane.xlu1 %2987  ;;  %4065 = vmatprep.subr.bf16.mxu1 %v4155_v38 }
0x1df0   :  { %v2999_v59 = vadd.f32 1e-06, %v2995_v39  ;;  %v2996_v14 = vmul.f32 0.03125, %v2988_v13  ;;  %v4156_v39 = vld [vmem:[%s5175_s7 + $0x8] sm:$0xff]  }
0x1df1   :  { %v2991_v21 = vpop.xlane.xlu0 %2990 }
0x1df2   :  { %4325 = vrsqrt.f32 %v2999_v59  ;;  %v3000_v45 = vadd.f32 1e-06, %v2996_v14  ;;  %v2997_v60 = vmul.f32 0.03125, %v2991_v21 }
0x1df3   :  { %v2994_v61 = vpop.xlane.xlu1 %2993 }
0x1df4   :  { %4327 = vrsqrt.f32 %v3000_v45  ;;  %v3001_v36 = vadd.f32 1e-06, %v2997_v60  ;;  %v2998_v37 = vmul.f32 0.03125, %v2994_v61 }
0x1df6   :  { %4329 = vrsqrt.f32 %v3001_v36  ;;  %v3002_v46 = vadd.f32 1e-06, %v2998_v37 }
0x1df8   :  { %4331 = vrsqrt.f32 %v3002_v46 }
0x1dfc   :  { %v4326_v0 = vpop.eup %4325 }
0x1dfd   :  { %v3007_v41 = vmul.f32 %v4326_v0, %v5092_v27  ;;  %v3600_v0 = vld [vmem:[%s5176_s8] ss:$0 sm:$0xff]  ;;  %s4463_s8 = scalar_lea.vmem %s3367_s23, 512 }
0x1dfe   :  { %v4328_v40 = vpop.eup %4327  ;;  %p4464_p12 = scmp.ne.s32.totalorder %s3367_s23, %s4463_s8  ;;  %p4469_p0 = scmp.lt.s32.totalorder %s4463_s8, %s4463_s8 }
0x1dff   :  { %v3008_v47 = vmul.f32 %v4328_v40, %v5098_v44 }
0x1e00   :  { %v4330_v48 = vpop.eup %4329  ;;  %p4470_p1 = por %p4469_p0, %p4468_p13 }
0x1e01   :  { %v3011_v49 = vpack.c.bf16 %v3008_v47, %v3007_v41  ;;  %v3009_v51 = vmul.f32 %v4330_v48, %v5089_v26 }
0x1e02   :  { %v4332_v50 = vpop.eup %4331  ;;  %p4471_p2 = pnand %p4470_p1, %p4464_p12 }
0x1e03   :  { %v3010_v52 = vmul.f32 %v4332_v50, %v5095_v28  ;;  %4041 = vmatprep.mubr.msk.bf16.mxu0 %vm122_vm0, %v3011_v49  ;;  %4049 = vmatprep.mubr.msk.bf16.mxu1 %vm122_vm0, %v3011_v49 }
0x1e05   :  { %v3012_v53 = vpack.c.bf16 %v3010_v52, %v3009_v51 }
0x1e07   :  { %4042 = vmatmul.mubr.msk.bf16.vlgmr.msra.gmra.mrb[68].mxu0 %vm122_vm0, %v3012_v53  ;;  %4050 = vmatmul.mubr.msk.bf16.vlgmr.msra.gmra.mrb[64].mxu1 %vm122_vm0, %v3012_v53 }
0x1e08   :  { %4054 = vmatpush3.bf16.msra.mxu0 %v4151_v55  ;;  %4066 = vmatpush3.bf16.msra.mxu1 %v4155_v38 }
0x1e09   :  { %4055 = vmatprep.subr.bf16.mxu0 %v4152_v56  ;;  %4067 = vmatprep.subr.bf16.mxu1 %v4156_v39 }
0x1e0c   :  { %4056 = vmatpush3.bf16.msra.mxu0 %v4152_v56  ;;  %4068 = vmatpush3.bf16.msra.mxu1 %v4156_v39 }
0x1e0d   :  { %4057 = vmatprep.subr.bf16.mxu0 %v4153_v42 }
0x1e10   :  { %4058 = vmatpush3.bf16.msra.mxu0 %v4153_v42 }
0x1e11   :  { %4059 = vmatprep.subr.bf16.mxu0 %v4154_v43 }
0x1e14   :  { %4060 = vmatpush3.bf16.msra.mxu0 %v4154_v43 }
0x1eda   :  { %v4043_v20 = vpop.f32.mrb[68].mxu0  ;;  %v4051_v62 = vpop.f32.mrb[64].mxu1 }
0x1edb   :  { %v3584_v54 = vmul.f32 -1.442695, %v4043_v20  ;;  %v3070_v9 = vpop.f32.mrb[69].mxu0  ;;  %v3136_v63 = vpop.f32.mrb[65].mxu1 }
0x1edc   :  { %v3582_v57 = vmul.f32 -1.442695, %v3070_v9  ;;  %v4044_v15 = vpop.f32.mrb[70].mxu0  ;;  %v4052_v1 = vpop.f32.mrb[66].mxu1 }
0x1edd   :  { %4333 = vpow2.f32 %v3584_v54  ;;  %v3585_v2 = vmul.f32 -1.442695, %v4044_v15  ;;  %v3073_v4 = vpop.f32.mrb[71].mxu0  ;;  %v3139_v5 = vpop.f32.mrb[67].mxu1 }
0x1ede   :  { %4335 = vpow2.f32 %v3582_v57  ;;  %v3583_v6 = vmul.f32 -1.442695, %v3073_v4 }
0x1edf   :  { %4337 = vpow2.f32 %v3585_v2 }
0x1ee0   :  { %4339 = vpow2.f32 %v3583_v6 }
0x1ee7   :  { %v4334_v10 = vpop.eup %4333 }
0x1ee8   :  { %v4336_v11 = vpop.eup %4335  ;;  %v3165_v17 = vadd.f32 1.0, %v4334_v10 }
0x1ee9   :  { %v4338_v18 = vpop.eup %4337  ;;  %v3163_v22 = vadd.f32 1.0, %v4336_v11 }
0x1eea   :  { %v4340_v23 = vpop.eup %4339  ;;  %4341 = vrcp.f32 %v3165_v17  ;;  %v3166_v24 = vadd.f32 1.0, %v4338_v18 }
0x1eeb   :  { %4343 = vrcp.f32 %v3163_v22  ;;  %v3164_v8 = vadd.f32 1.0, %v4340_v23 }
0x1eec   :  { %4345 = vrcp.f32 %v3166_v24 }
0x1eed   :  { %4347 = vrcp.f32 %v3164_v8 }
0x1ef4   :  { %v4342_v16 = vpop.eup %4341 }
0x1ef5   :  { %v4344_v58 = vpop.eup %4343  ;;  %v3177_v19 = vmul.f32 %v4342_v16, %v4043_v20 }
0x1ef6   :  { %v4346_v29 = vpop.eup %4345  ;;  %v3175_v3 = vmul.f32 %v4344_v58, %v3070_v9 }
0x1ef7   :  { %v4348_v7 = vpop.eup %4347  ;;  %v3181_v30 = vmul.f32 %v4051_v62, %v3177_v19  ;;  %v3178_v12 = vmul.f32 %v4346_v29, %v4044_v15 }
0x1ef8   :  { %v3179_v25 = vmul.f32 %v3175_v3, %v3136_v63  ;;  %v3176_v31 = vmul.f32 %v4348_v7, %v3073_v4 }
0x1ef9   :  { %v3182_v32 = vmul.f32 %v4052_v1, %v3178_v12 }
0x1efa   :  { %v3180_v33 = vmul.f32 %v3176_v31, %v3139_v5 }
0x1efb   :  { %v3184_v34 = vpack.c.bf16 %v3182_v32, %v3181_v30 }
0x1efc   :  { %v3183_v35 = vpack.c.bf16 %v3180_v33, %v3179_v25 }
0x1efe   :  { %4061 = vmatprep.mubr.msk.bf16.mxu0 %vm847_vm1, %v3183_v35 }
0x1eff   :  { %4062 = vmatmul.mubr.msk.bf16.vlgmr.msra.gmra.mrb[72].mxu0 %vm847_vm1, %v3184_v34 }
0x1fd2   :  { %v4063_v13 = vpop.f32.mrb[72].mxu0 }
0x1fd3   :  { %v3258_v59 = vpop.f32.mrb[73].mxu0  ;;  %v3275_v21 = vadd.f32 %v4063_v13, %v5089_v26 }
0x1fd4   :  { %v4064_v14 = vpop.f32.mrb[74].mxu0  ;;  %v3273_v61 = vadd.f32 %v3258_v59, %v5092_v27 }
0x1fd5   :  { %v3276_v45 = vadd.f32 %v4064_v14, %v5095_v28  ;;  %v3261_v60 = vpop.f32.mrb[75].mxu0 }
0x1fd6   :  { %v3274_v36 = vadd.f32 %v3261_v60, %v5098_v44 }
0x1fd7   :  { %v3278_v37 = vpack.c.bf16 %v3276_v45, %v3275_v21 }
0x1fd8   :  { %v3277_v46 = vpack.c.bf16 %v3274_v36, %v3273_v61 }
0x1fda   :  { %4069 = vmatprep.mubr.msk.bf16.mxu1 %vm122_vm0, %v3277_v46 }
0x1fdb   :  { %4070 = vmatmul.mubr.msk.bf16.vlgmr.msra.gmra.mrb[68].mxu1 %vm122_vm0, %v3278_v37 }
0x20ae   :  { %v4071_v40 = vpop.f32.mrb[68].mxu1 }
0x20af   :  { %v3351_v41 = vadd.f32 %v4071_v40, %v3600_v0  ;;  %v3342_v26 = vpop.f32.mrb[69].mxu1 }
0x20b0   :  { %v3343_v28 = vadd.f32 %v3600_v0, %v3342_v26  ;;  %v4072_v47 = vpop.f32.mrb[70].mxu1 }
0x20b1   :  { %3359 = vst.msk [vmem:[#allocation11 + $0x10] sm:$0xff] %vm122_vm0, %v3351_v41  ;;  %v3354_v27 = vadd.f32 %v4072_v47, %v3600_v0  ;;  %v3345_v44 = vpop.f32.mrb[71].mxu1 }
0x20b2   :  { %3357 = vst.msk [vmem:[#allocation11] sm:$0xff] %vm122_vm0, %v3343_v28  ;;  %v3346_v48 = vadd.f32 %v3600_v0, %v3345_v44 }
0x20b3   :  { %3360 = vst.msk [vmem:[#allocation11 + $0x18] sm:$0xff] %vm122_vm0, %v3354_v27 }
0x20b4   :  { %3358 = vst.msk [vmem:[#allocation11 + $0x8] sm:$0xff] %vm122_vm0, %v3346_v48 }
0x20b5   :  { %4474 = shalt.err (!%p4471_p2)
}
0x20b6   :  { %s4475_s26 = scalar_lea.hbm %s5177_s9, 512 }
0x20b7   :  { %p4476_p3 = scmp.ne.s32.totalorder %s5177_s9, %s4475_s26  ;;  %p4479_p4 = scmp.lt.u32.totalorder %s4475_s26, %s5177_s9 }
0x20b9   :  { %p4481_p5 = pnand %p4479_p4, %p4476_p3 }
0x20bb   :  { %4484 = shalt.err (!%p4481_p5)
}
0x20bc   :  { %3372 = dma.vmem_to_hbm [thread:$0]  %s3367_s23, 512, %s5177_s9, [#allocation4], %s4495_s21, %s4495_s21, %s4496_s22  }
0x20bd   :  { %4491 = dma.done.wait [#allocation4], 512  }
0x20be   :  { %4492 = vsyncadd [#allocation4], 4294966784 }
0x20bf   :  { %3376 = vsyncpa [#allocation3], 1 }
0x20c0   :  { %3377 = vsyncpa [#allocation6], 1 }
0x20c1   :  { %3378 = vsyncpa [#allocation9], 1 }
0x20c2   :  { %3379 = vsyncpa [#allocation4], 1 }

</bundles_post_ra>
